<compile_context>
chip_gen: v7x
topology: tpu7x:2x2x1
jax: 0.10.0
libtpu: 0.0.40
codegen_flags: <defaults>
</compile_context>

<pallas_src>
import functools

import jax
import jax.numpy as jnp
from jax.experimental import pallas as pl
from jax.experimental.pallas import tpu as pltpu

EPS = 1e-5                      # torch.nn.LayerNorm default eps
_INV_SQRT2 = 0.7071067811865476


def _round_up(n, m):
    return ((n + m - 1) // m) * m


def mixer_block_kernel(x_ref,
                       ln1_g_ref, ln1_b_ref,
                       tw1_ref, tb1_ref, tw2_ref, tb2_ref,
                       ln2_g_ref, ln2_b_ref,
                       cw1_ref, cb1_ref, cw2_ref, cb2_ref,
                       o_ref,
                       xt_ref,
                       *, num_channels):
    bt, pp, cp = x_ref.shape
    inv_c = 1.0 / num_channels          # true (unpadded) channel count
    f32 = jnp.float32
    bf16 = jnp.bfloat16

    ln1_g = ln1_g_ref[...]              # (1, Cp)   f32, zero-padded
    ln1_b = ln1_b_ref[...]
    ln2_g = ln2_g_ref[...]
    ln2_b = ln2_b_ref[...]
    tw1 = tw1_ref[...]                  # (Htp, Pp) bf16  -- Linear(P->Ht).weight
    tb1 = tb1_ref[...]                  # (Htp, 1)  f32   -- column bias
    tw2 = tw2_ref[...]                  # (Pp, Htp) bf16  -- Linear(Ht->P).weight
    tb2 = tb2_ref[...]                  # (Pp, 1)   f32
    cw1 = cw1_ref[...]                  # (Cp, Hcp) bf16  -- W1^T
    cb1 = cb1_ref[...]                  # (1, Hcp)  f32
    cw2 = cw2_ref[...]                  # (Hcp, Cp) bf16  -- W2^T
    cb2 = cb2_ref[...]                  # (1, Cp)   f32

    def layernorm(v, g, b):
        # Padded channel lanes of v are 0, so plain sums with the true-C
        # divisor give the correct mean / E[x^2]; zero-padded gamma/beta keep
        # padded output lanes at exactly 0.
        mean = jnp.sum(v, axis=-1, keepdims=True) * inv_c
        msq = jnp.sum(v * v, axis=-1, keepdims=True) * inv_c
        var = msq - mean * mean
        return (v - mean) * jax.lax.rsqrt(var + EPS) * g + b

    def gelu(v):
        # Exact erf-based GELU (torch.nn.GELU() default), kept in f32.
        return 0.5 * v * (1.0 + jax.lax.erf(v * _INV_SQRT2))

    if cp > num_channels:
        lane = jax.lax.broadcasted_iota(jnp.int32, (1, cp), 1)
        c_mask = (lane < num_channels).astype(f32)
    else:
        c_mask = None

    # ---------------- token mixing (per batch element, no transposes) -------
    for b in range(bt):
        xb = x_ref[b]                                           # (Pp, Cp) f32
        xn = layernorm(xb, ln1_g, ln1_b)
        h = jnp.dot(tw1, xn.astype(bf16),
                    preferred_element_type=f32) + tb1           # (Htp, Cp)
        h = gelu(h)
        t2 = jnp.dot(tw2, h.astype(bf16),
                     preferred_element_type=f32) + tb2          # (Pp, Cp)
        if c_mask is not None:
            t2 = t2 * c_mask          # keep padded channel lanes exactly zero
        xt_ref[b * pp:(b + 1) * pp, :] = xb + t2                # residual

    # ---------------- channel mixing on the fused (bt*Pp, Cp) slab ----------
    xt = xt_ref[...]
    xn2 = layernorm(xt, ln2_g, ln2_b)
    h2 = gelu(jnp.dot(xn2.astype(bf16), cw1,
                      preferred_element_type=f32) + cb1)        # (M, Hcp)
    y = jnp.dot(h2.astype(bf16), cw2,
                preferred_element_type=f32) + cb2               # (M, Cp)
    out = xt + y

    for b in range(bt):
        o_ref[b] = out[b * pp:(b + 1) * pp, :].astype(o_ref.dtype)


def mixer_block(x, params, *, bt=None):
    """x: (B, P, C) float32. params: dict of weights (see init_params)."""
    B, P, C = x.shape
    Ht = params["tw1"].shape[1]
    Hc = params["cw1"].shape[1]

    if bt is None:
        # Largest divisor of B that is <= 8 (amortize per-grid-step overhead).
        # On v7x prefer a bt that keeps B // bt even so both TensorCores work.
        bt = max(d for d in range(1, min(B, 8) + 1) if B % d == 0)
    assert B % bt == 0, "bt must divide the batch size"

    # Lane-dense padded sizes.
    Pp = _round_up(P, 8)
    Cp = _round_up(C, 128)
    Htp = _round_up(Ht, 128)
    Hcp = _round_up(Hc, 128)

    f32, bf16 = jnp.float32, jnp.bfloat16

    def pad2(a, rows, cols):
        return jnp.pad(a, ((0, rows - a.shape[0]), (0, cols - a.shape[1])))

    x_p = jnp.pad(x, ((0, 0), (0, Pp - P), (0, Cp - C)))

    # LayerNorm params, zero-padded in the channel lanes.
    ln1_g = pad2(params["ln1_g"], 1, Cp).astype(f32)
    ln1_b = pad2(params["ln1_b"], 1, Cp).astype(f32)
    ln2_g = pad2(params["ln2_g"], 1, Cp).astype(f32)
    ln2_b = pad2(params["ln2_b"], 1, Cp).astype(f32)

    # Token-mixing weights in native torch Linear (out, in) layout so both
    # in-kernel matmuls are canonical contractions (no transposes). bf16 in HBM.
    tw1 = pad2(params["tw1"].T, Htp, Pp).astype(bf16)    # (Ht, P)
    tb1 = pad2(params["tb1"].T, Htp, 1).astype(f32)      # (Ht, 1)
    tw2 = pad2(params["tw2"].T, Pp, Htp).astype(bf16)    # (P, Ht)
    tb2 = pad2(params["tb2"].T, Pp, 1).astype(f32)       # (P, 1)

    # Channel-mixing weights already stored as x @ W^T operands.
    cw1 = pad2(params["cw1"], Cp, Hcp).astype(bf16)      # (C, Hc)
    cb1 = pad2(params["cb1"], 1, Hcp).astype(f32)
    cw2 = pad2(params["cw2"], Hcp, Cp).astype(bf16)      # (Hc, C)
    cb2 = pad2(params["cb2"], 1, Cp).astype(f32)

    def full_spec(shape):
        # Grid-invariant full-array block: DMA'd once, not re-fetched per step.
        return pl.BlockSpec(shape, lambda b: (0,) * len(shape))

    grid_spec = pltpu.PrefetchScalarGridSpec(
        num_scalar_prefetch=0,
        grid=(B // bt,),
        in_specs=[
            pl.BlockSpec((bt, Pp, Cp), lambda b: (b, 0, 0)),   # x
            full_spec((1, Cp)),                                # ln1 gamma
            full_spec((1, Cp)),                                # ln1 beta
            full_spec((Htp, Pp)),                              # token W1
            full_spec((Htp, 1)),                               # token b1
            full_spec((Pp, Htp)),                              # token W2
            full_spec((Pp, 1)),                                # token b2
            full_spec((1, Cp)),                                # ln2 gamma
            full_spec((1, Cp)),                                # ln2 beta
            full_spec((Cp, Hcp)),                              # channel W1^T
            full_spec((1, Hcp)),                               # channel b1
            full_spec((Hcp, Cp)),                              # channel W2^T
            full_spec((1, Cp)),                                # channel b2
        ],
        out_specs=pl.BlockSpec((bt, Pp, Cp), lambda b: (b, 0, 0)),
        scratch_shapes=[pltpu.VMEM((bt * Pp, Cp), jnp.float32)],
    )

    out = pl.pallas_call(
        functools.partial(mixer_block_kernel, num_channels=C),
        out_shape=jax.ShapeDtypeStruct((B, Pp, Cp), x.dtype),
        grid_spec=grid_spec,
        compiler_params=pltpu.CompilerParams(
            dimension_semantics=("parallel",),
            vmem_limit_bytes=64 * 1024 * 1024),
    )(x_p,
      ln1_g, ln1_b,
      tw1, tb1, tw2, tb2,
      ln2_g, ln2_b,
      cw1, cb1, cw2, cb2)

    return out[:, :P, :C]


def init_params(key, num_patches, num_channels, tokens_hidden, channels_hidden):
    ks = jax.random.split(key, 8)
    s = 0.02

    def w(k, shape):
        return (s * jax.random.normal(k, shape)).astype(jnp.float32)

    return {
        # LayerNorm 1 (over channels)
        "ln1_g": jnp.ones((1, num_channels), jnp.float32),
        "ln1_b": jnp.zeros((1, num_channels), jnp.float32),
        # token-mixing MLP: Linear(P -> Ht), GELU, Linear(Ht -> P)
        # stored pre-transposed (x @ W^T layout); the wrapper re-lays them out.
        "tw1": w(ks[0], (num_patches, tokens_hidden)),
        "tb1": w(ks[1], (1, tokens_hidden)),
        "tw2": w(ks[2], (tokens_hidden, num_patches)),
        "tb2": w(ks[3], (1, num_patches)),
        # LayerNorm 2 (over channels)
        "ln2_g": jnp.ones((1, num_channels), jnp.float32),
        "ln2_b": jnp.zeros((1, num_channels), jnp.float32),
        # channel-mixing MLP: Linear(C -> Hc), GELU, Linear(Hc -> C)
        "cw1": w(ks[4], (num_channels, channels_hidden)),
        "cb1": w(ks[5], (1, channels_hidden)),
        "cw2": w(ks[6], (channels_hidden, num_channels)),
        "cb2": w(ks[7], (1, num_channels)),
    }


def mixer_block_ref(x, p):
    # Pure-JAX f32 reference matching the PyTorch module.
    def ln(v, g, b):
        m = v.mean(-1, keepdims=True)
        var = ((v - m) ** 2).mean(-1, keepdims=True)
        return (v - m) / jnp.sqrt(var + EPS) * g + b

    gelu = lambda v: 0.5 * v * (1.0 + jax.lax.erf(v / jnp.sqrt(2.0)))
    xn = ln(x, p["ln1_g"], p["ln1_b"])                 # (B,P,C)
    t = jnp.swapaxes(xn, 1, 2)                         # (B,C,P)
    t = gelu(t @ p["tw1"] + p["tb1"]) @ p["tw2"] + p["tb2"]
    x = x + jnp.swapaxes(t, 1, 2)
    xn2 = ln(x, p["ln2_g"], p["ln2_b"])
    y = gelu(xn2 @ p["cw1"] + p["cb1"]) @ p["cw2"] + p["cb2"]
    return x + y


if __name__ == "__main__":
    B, P, C = 4, 16, 8          # batch, num_patches, num_channels
    Ht, Hc = 32, 32             # tokens_hidden_dim, channels_hidden_dim

    key = jax.random.PRNGKey(0)
    kx, kp = jax.random.split(key)
    x = jax.random.normal(kx, (B, P, C), dtype=jnp.float32)
    params = init_params(kp, P, C, Ht, Hc)

    # bt=2 -> grid=(2,): 2 batch elements per grid step, even parallel grid.
    out = mixer_block(x, params, bt=2)
    out = jax.block_until_ready(out)

    ref = mixer_block_ref(x, params)
    assert out.shape == (B, P, C)
    # bf16 MXU operands => slightly looser tolerance than a pure-f32 compare.
    assert jnp.allclose(out, ref, atol=1e-2, rtol=1e-2), \
        float(jnp.max(jnp.abs(out - ref)))

    print("KERNEL_OK")
</pallas_src>

<mosaic_0001>
module attributes {stable_mosaic.version = 11 : i64} {
  func.func @mixer_block_kernel(%arg0: i32, %arg1: memref<2x16x128xf32, #tpu.memory_space<vmem>>, %arg2: memref<1x128xf32, #tpu.memory_space<vmem>>, %arg3: memref<1x128xf32, #tpu.memory_space<vmem>>, %arg4: memref<128x16xbf16, #tpu.memory_space<vmem>>, %arg5: memref<128x1xf32, #tpu.memory_space<vmem>>, %arg6: memref<16x128xbf16, #tpu.memory_space<vmem>>, %arg7: memref<16x1xf32, #tpu.memory_space<vmem>>, %arg8: memref<1x128xf32, #tpu.memory_space<vmem>>, %arg9: memref<1x128xf32, #tpu.memory_space<vmem>>, %arg10: memref<128x128xbf16, #tpu.memory_space<vmem>>, %arg11: memref<1x128xf32, #tpu.memory_space<vmem>>, %arg12: memref<128x128xbf16, #tpu.memory_space<vmem>>, %arg13: memref<1x128xf32, #tpu.memory_space<vmem>>, %arg14: memref<2x16x128xf32, #tpu.memory_space<vmem>>, %arg15: memref<32x128xf32, #tpu.memory_space<vmem>>) attributes {dimension_semantics = [#tpu.dimension_semantics<parallel>], iteration_bounds = array<i64: 2>, scalar_prefetch = 0 : i64, scratch_operands = 1 : i64, tpu.core_type = #tpu.core_type<tc>, window_params = [{transform_indices = @transform_0, window_bounds = array<i64: 2, 16, 128>}, {pipeline_mode = #tpu.pipeline_mode<synchronous>, transform_indices = @transform_1, window_bounds = array<i64: 1, 128>}, {pipeline_mode = #tpu.pipeline_mode<synchronous>, transform_indices = @transform_2, window_bounds = array<i64: 1, 128>}, {pipeline_mode = #tpu.pipeline_mode<synchronous>, transform_indices = @transform_3, window_bounds = array<i64: 128, 16>}, {pipeline_mode = #tpu.pipeline_mode<synchronous>, transform_indices = @transform_4, window_bounds = array<i64: 128, 1>}, {pipeline_mode = #tpu.pipeline_mode<synchronous>, transform_indices = @transform_5, window_bounds = array<i64: 16, 128>}, {pipeline_mode = #tpu.pipeline_mode<synchronous>, transform_indices = @transform_6, window_bounds = array<i64: 16, 1>}, {pipeline_mode = #tpu.pipeline_mode<synchronous>, transform_indices = @transform_7, window_bounds = array<i64: 1, 128>}, {pipeline_mode = #tpu.pipeline_mode<synchronous>, transform_indices = @transform_8, window_bounds = array<i64: 1, 128>}, {pipeline_mode = #tpu.pipeline_mode<synchronous>, transform_indices = @transform_9, window_bounds = array<i64: 128, 128>}, {pipeline_mode = #tpu.pipeline_mode<synchronous>, transform_indices = @transform_10, window_bounds = array<i64: 1, 128>}, {pipeline_mode = #tpu.pipeline_mode<synchronous>, transform_indices = @transform_11, window_bounds = array<i64: 128, 128>}, {pipeline_mode = #tpu.pipeline_mode<synchronous>, transform_indices = @transform_12, window_bounds = array<i64: 1, 128>}, {transform_indices = @transform_13, window_bounds = array<i64: 2, 16, 128>}]} {
    %c0 = arith.constant 0 : index
    %c0_0 = arith.constant 0 : index
    %0 = vector.load %arg2[%c0, %c0_0] : memref<1x128xf32, #tpu.memory_space<vmem>>, vector<1x128xf32>
    %c0_1 = arith.constant 0 : index
    %c0_2 = arith.constant 0 : index
    %1 = vector.load %arg3[%c0_1, %c0_2] : memref<1x128xf32, #tpu.memory_space<vmem>>, vector<1x128xf32>
    %c0_3 = arith.constant 0 : index
    %c0_4 = arith.constant 0 : index
    %2 = vector.load %arg8[%c0_3, %c0_4] : memref<1x128xf32, #tpu.memory_space<vmem>>, vector<1x128xf32>
    %c0_5 = arith.constant 0 : index
    %c0_6 = arith.constant 0 : index
    %3 = vector.load %arg9[%c0_5, %c0_6] : memref<1x128xf32, #tpu.memory_space<vmem>>, vector<1x128xf32>
    %c0_7 = arith.constant 0 : index
    %c0_8 = arith.constant 0 : index
    %4 = vector.load %arg4[%c0_7, %c0_8] : memref<128x16xbf16, #tpu.memory_space<vmem>>, vector<128x16xbf16>
    %c0_9 = arith.constant 0 : index
    %c0_10 = arith.constant 0 : index
    %5 = vector.load %arg5[%c0_9, %c0_10] : memref<128x1xf32, #tpu.memory_space<vmem>>, vector<128x1xf32>
    %c0_11 = arith.constant 0 : index
    %c0_12 = arith.constant 0 : index
    %6 = vector.load %arg6[%c0_11, %c0_12] : memref<16x128xbf16, #tpu.memory_space<vmem>>, vector<16x128xbf16>
    %c0_13 = arith.constant 0 : index
    %c0_14 = arith.constant 0 : index
    %7 = vector.load %arg7[%c0_13, %c0_14] : memref<16x1xf32, #tpu.memory_space<vmem>>, vector<16x1xf32>
    %c0_15 = arith.constant 0 : index
    %c0_16 = arith.constant 0 : index
    %8 = vector.load %arg10[%c0_15, %c0_16] : memref<128x128xbf16, #tpu.memory_space<vmem>>, vector<128x128xbf16>
    %c0_17 = arith.constant 0 : index
    %c0_18 = arith.constant 0 : index
    %9 = vector.load %arg11[%c0_17, %c0_18] : memref<1x128xf32, #tpu.memory_space<vmem>>, vector<1x128xf32>
    %c0_19 = arith.constant 0 : index
    %c0_20 = arith.constant 0 : index
    %10 = vector.load %arg12[%c0_19, %c0_20] : memref<128x128xbf16, #tpu.memory_space<vmem>>, vector<128x128xbf16>
    %c0_21 = arith.constant 0 : index
    %c0_22 = arith.constant 0 : index
    %11 = vector.load %arg13[%c0_21, %c0_22] : memref<1x128xf32, #tpu.memory_space<vmem>>, vector<1x128xf32>
    %12 = tpu.iota {dimensions = array<i32: 1>} : vector<1x128xi32>
    %c8_i32 = arith.constant 8 : i32
    %13 = vector.broadcast %c8_i32 : i32 to vector<1x128xi32>
    %14 = arith.cmpi slt, %12, %13 : vector<1x128xi32>
    %15 = arith.extui %14 : vector<1x128xi1> to vector<1x128xi32>
    %16 = arith.sitofp %15 : vector<1x128xi32> to vector<1x128xf32>
    %c0_23 = arith.constant 0 : index
    %c0_24 = arith.constant 0 : index
    %c0_25 = arith.constant 0 : index
    %17 = vector.load %arg1[%c0_23, %c0_24, %c0_25] : memref<2x16x128xf32, #tpu.memory_space<vmem>>, vector<1x16x128xf32>
    %18 = vector.shape_cast %17 : vector<1x16x128xf32> to vector<16x128xf32>
    %cst = arith.constant dense<0.000000e+00> : vector<16xf32>
    %19 = vector.multi_reduction <add>, %18, %cst [1] : vector<16x128xf32> to vector<16xf32>
    %20 = vector.shape_cast %19 : vector<16xf32> to vector<16x1xf32>
    %cst_26 = arith.constant 1.250000e-01 : f32
    %21 = vector.broadcast %cst_26 : f32 to vector<16x1xf32>
    %22 = arith.mulf %20, %21 : vector<16x1xf32>
    %23 = arith.mulf %18, %18 : vector<16x128xf32>
    %cst_27 = arith.constant dense<0.000000e+00> : vector<16xf32>
    %24 = vector.multi_reduction <add>, %23, %cst_27 [1] : vector<16x128xf32> to vector<16xf32>
    %25 = vector.shape_cast %24 : vector<16xf32> to vector<16x1xf32>
    %cst_28 = arith.constant 1.250000e-01 : f32
    %26 = vector.broadcast %cst_28 : f32 to vector<16x1xf32>
    %27 = arith.mulf %25, %26 : vector<16x1xf32>
    %28 = arith.mulf %22, %22 : vector<16x1xf32>
    %29 = arith.subf %27, %28 : vector<16x1xf32>
    %30 = vector.broadcast %22 : vector<16x1xf32> to vector<16x128xf32>
    %31 = arith.subf %18, %30 : vector<16x128xf32>
    %cst_29 = arith.constant 9.99999974E-6 : f32
    %32 = vector.broadcast %cst_29 : f32 to vector<16x1xf32>
    %33 = arith.addf %29, %32 : vector<16x1xf32>
    %34 = math.rsqrt %33 : vector<16x1xf32>
    %35 = vector.broadcast %34 : vector<16x1xf32> to vector<16x128xf32>
    %36 = arith.mulf %31, %35 : vector<16x128xf32>
    %37 = vector.broadcast %0 : vector<1x128xf32> to vector<16x128xf32>
    %38 = arith.mulf %36, %37 : vector<16x128xf32>
    %39 = vector.broadcast %1 : vector<1x128xf32> to vector<16x128xf32>
    %40 = arith.addf %38, %39 : vector<16x128xf32>
    %41 = arith.truncf %40 : vector<16x128xf32> to vector<16x128xbf16>
    %cst_30 = arith.constant dense<0.000000e+00> : vector<128x128xf32>
    %42 = tpu.matmul %4, %41, %cst_30 {dimension_numbers = #tpu.dot_dimension_numbers<[1], [0], [0], [1], [0, 0, 1, 1], [], []>} : vector<128x16xbf16>, vector<16x128xbf16>, vector<128x128xf32> -> vector<128x128xf32>
    %43 = vector.broadcast %5 : vector<128x1xf32> to vector<128x128xf32>
    %44 = arith.addf %42, %43 : vector<128x128xf32>
    %cst_31 = arith.constant 5.000000e-01 : f32
    %45 = vector.broadcast %cst_31 : f32 to vector<128x128xf32>
    %46 = arith.mulf %45, %44 : vector<128x128xf32>
    %cst_32 = arith.constant 0.707106769 : f32
    %47 = vector.broadcast %cst_32 : f32 to vector<128x128xf32>
    %48 = arith.mulf %44, %47 : vector<128x128xf32>
    %49 = math.erf %48 : vector<128x128xf32>
    %cst_33 = arith.constant 1.000000e+00 : f32
    %50 = vector.broadcast %cst_33 : f32 to vector<128x128xf32>
    %51 = arith.addf %50, %49 : vector<128x128xf32>
    %52 = arith.mulf %46, %51 : vector<128x128xf32>
    %53 = arith.truncf %52 : vector<128x128xf32> to vector<128x128xbf16>
    %cst_34 = arith.constant dense<0.000000e+00> : vector<16x128xf32>
    %54 = tpu.matmul %6, %53, %cst_34 {dimension_numbers = #tpu.dot_dimension_numbers<[1], [0], [0], [1], [0, 0, 1, 1], [], []>} : vector<16x128xbf16>, vector<128x128xbf16>, vector<16x128xf32> -> vector<16x128xf32>
    %55 = vector.broadcast %7 : vector<16x1xf32> to vector<16x128xf32>
    %56 = arith.addf %54, %55 : vector<16x128xf32>
    %57 = vector.broadcast %16 : vector<1x128xf32> to vector<16x128xf32>
    %58 = arith.mulf %56, %57 : vector<16x128xf32>
    %59 = arith.addf %18, %58 : vector<16x128xf32>
    %c0_35 = arith.constant 0 : index
    %c0_36 = arith.constant 0 : index
    %60 = vector.load %arg15[%c0_35, %c0_36] : memref<32x128xf32, #tpu.memory_space<vmem>>, vector<16x128xf32>
    tpu.vector_store %arg15[%c0_35, %c0_36], %59 {strides = array<i32>} : memref<32x128xf32, #tpu.memory_space<vmem>>, vector<16x128xf32>,
    %c1 = arith.constant 1 : index
    %c0_37 = arith.constant 0 : index
    %c0_38 = arith.constant 0 : index
    %61 = vector.load %arg1[%c1, %c0_37, %c0_38] : memref<2x16x128xf32, #tpu.memory_space<vmem>>, vector<1x16x128xf32>
    %62 = vector.shape_cast %61 : vector<1x16x128xf32> to vector<16x128xf32>
    %cst_39 = arith.constant dense<0.000000e+00> : vector<16xf32>
    %63 = vector.multi_reduction <add>, %62, %cst_39 [1] : vector<16x128xf32> to vector<16xf32>
    %64 = vector.shape_cast %63 : vector<16xf32> to vector<16x1xf32>
    %cst_40 = arith.constant 1.250000e-01 : f32
    %65 = vector.broadcast %cst_40 : f32 to vector<16x1xf32>
    %66 = arith.mulf %64, %65 : vector<16x1xf32>
    %67 = arith.mulf %62, %62 : vector<16x128xf32>
    %cst_41 = arith.constant dense<0.000000e+00> : vector<16xf32>
    %68 = vector.multi_reduction <add>, %67, %cst_41 [1] : vector<16x128xf32> to vector<16xf32>
    %69 = vector.shape_cast %68 : vector<16xf32> to vector<16x1xf32>
    %cst_42 = arith.constant 1.250000e-01 : f32
    %70 = vector.broadcast %cst_42 : f32 to vector<16x1xf32>
    %71 = arith.mulf %69, %70 : vector<16x1xf32>
    %72 = arith.mulf %66, %66 : vector<16x1xf32>
    %73 = arith.subf %71, %72 : vector<16x1xf32>
    %74 = vector.broadcast %66 : vector<16x1xf32> to vector<16x128xf32>
    %75 = arith.subf %62, %74 : vector<16x128xf32>
    %cst_43 = arith.constant 9.99999974E-6 : f32
    %76 = vector.broadcast %cst_43 : f32 to vector<16x1xf32>
    %77 = arith.addf %73, %76 : vector<16x1xf32>
    %78 = math.rsqrt %77 : vector<16x1xf32>
    %79 = vector.broadcast %78 : vector<16x1xf32> to vector<16x128xf32>
    %80 = arith.mulf %75, %79 : vector<16x128xf32>
    %81 = vector.broadcast %0 : vector<1x128xf32> to vector<16x128xf32>
    %82 = arith.mulf %80, %81 : vector<16x128xf32>
    %83 = vector.broadcast %1 : vector<1x128xf32> to vector<16x128xf32>
    %84 = arith.addf %82, %83 : vector<16x128xf32>
    %85 = arith.truncf %84 : vector<16x128xf32> to vector<16x128xbf16>
    %cst_44 = arith.constant dense<0.000000e+00> : vector<128x128xf32>
    %86 = tpu.matmul %4, %85, %cst_44 {dimension_numbers = #tpu.dot_dimension_numbers<[1], [0], [0], [1], [0, 0, 1, 1], [], []>} : vector<128x16xbf16>, vector<16x128xbf16>, vector<128x128xf32> -> vector<128x128xf32>
    %87 = vector.broadcast %5 : vector<128x1xf32> to vector<128x128xf32>
    %88 = arith.addf %86, %87 : vector<128x128xf32>
    %cst_45 = arith.constant 5.000000e-01 : f32
    %89 = vector.broadcast %cst_45 : f32 to vector<128x128xf32>
    %90 = arith.mulf %89, %88 : vector<128x128xf32>
    %cst_46 = arith.constant 0.707106769 : f32
    %91 = vector.broadcast %cst_46 : f32 to vector<128x128xf32>
    %92 = arith.mulf %88, %91 : vector<128x128xf32>
    %93 = math.erf %92 : vector<128x128xf32>
    %cst_47 = arith.constant 1.000000e+00 : f32
    %94 = vector.broadcast %cst_47 : f32 to vector<128x128xf32>
    %95 = arith.addf %94, %93 : vector<128x128xf32>
    %96 = arith.mulf %90, %95 : vector<128x128xf32>
    %97 = arith.truncf %96 : vector<128x128xf32> to vector<128x128xbf16>
    %cst_48 = arith.constant dense<0.000000e+00> : vector<16x128xf32>
    %98 = tpu.matmul %6, %97, %cst_48 {dimension_numbers = #tpu.dot_dimension_numbers<[1], [0], [0], [1], [0, 0, 1, 1], [], []>} : vector<16x128xbf16>, vector<128x128xbf16>, vector<16x128xf32> -> vector<16x128xf32>
    %99 = vector.broadcast %7 : vector<16x1xf32> to vector<16x128xf32>
    %100 = arith.addf %98, %99 : vector<16x128xf32>
    %101 = vector.broadcast %16 : vector<1x128xf32> to vector<16x128xf32>
    %102 = arith.mulf %100, %101 : vector<16x128xf32>
    %103 = arith.addf %62, %102 : vector<16x128xf32>
    %c16 = arith.constant 16 : index
    %c0_49 = arith.constant 0 : index
    %104 = vector.load %arg15[%c16, %c0_49] : memref<32x128xf32, #tpu.memory_space<vmem>>, vector<16x128xf32>
    tpu.vector_store %arg15[%c16, %c0_49], %103 {strides = array<i32>} : memref<32x128xf32, #tpu.memory_space<vmem>>, vector<16x128xf32>,
    %c0_50 = arith.constant 0 : index
    %c0_51 = arith.constant 0 : index
    %105 = vector.load %arg15[%c0_50, %c0_51] : memref<32x128xf32, #tpu.memory_space<vmem>>, vector<32x128xf32>
    %cst_52 = arith.constant dense<0.000000e+00> : vector<32xf32>
    %106 = vector.multi_reduction <add>, %105, %cst_52 [1] : vector<32x128xf32> to vector<32xf32>
    %107 = vector.shape_cast %106 : vector<32xf32> to vector<32x1xf32>
    %cst_53 = arith.constant 1.250000e-01 : f32
    %108 = vector.broadcast %cst_53 : f32 to vector<32x1xf32>
    %109 = arith.mulf %107, %108 : vector<32x1xf32>
    %110 = arith.mulf %105, %105 : vector<32x128xf32>
    %cst_54 = arith.constant dense<0.000000e+00> : vector<32xf32>
    %111 = vector.multi_reduction <add>, %110, %cst_54 [1] : vector<32x128xf32> to vector<32xf32>
    %112 = vector.shape_cast %111 : vector<32xf32> to vector<32x1xf32>
    %cst_55 = arith.constant 1.250000e-01 : f32
    %113 = vector.broadcast %cst_55 : f32 to vector<32x1xf32>
    %114 = arith.mulf %112, %113 : vector<32x1xf32>
    %115 = arith.mulf %109, %109 : vector<32x1xf32>
    %116 = arith.subf %114, %115 : vector<32x1xf32>
    %117 = vector.broadcast %109 : vector<32x1xf32> to vector<32x128xf32>
    %118 = arith.subf %105, %117 : vector<32x128xf32>
    %cst_56 = arith.constant 9.99999974E-6 : f32
    %119 = vector.broadcast %cst_56 : f32 to vector<32x1xf32>
    %120 = arith.addf %116, %119 : vector<32x1xf32>
    %121 = math.rsqrt %120 : vector<32x1xf32>
    %122 = vector.broadcast %121 : vector<32x1xf32> to vector<32x128xf32>
    %123 = arith.mulf %118, %122 : vector<32x128xf32>
    %124 = vector.broadcast %2 : vector<1x128xf32> to vector<32x128xf32>
    %125 = arith.mulf %123, %124 : vector<32x128xf32>
    %126 = vector.broadcast %3 : vector<1x128xf32> to vector<32x128xf32>
    %127 = arith.addf %125, %126 : vector<32x128xf32>
    %128 = arith.truncf %127 : vector<32x128xf32> to vector<32x128xbf16>
    %cst_57 = arith.constant dense<0.000000e+00> : vector<32x128xf32>
    %129 = tpu.matmul %128, %8, %cst_57 {dimension_numbers = #tpu.dot_dimension_numbers<[1], [0], [0], [1], [0, 0, 1, 1], [], []>} : vector<32x128xbf16>, vector<128x128xbf16>, vector<32x128xf32> -> vector<32x128xf32>
    %130 = vector.broadcast %9 : vector<1x128xf32> to vector<32x128xf32>
    %131 = arith.addf %129, %130 : vector<32x128xf32>
    %cst_58 = arith.constant 5.000000e-01 : f32
    %132 = vector.broadcast %cst_58 : f32 to vector<32x128xf32>
    %133 = arith.mulf %132, %131 : vector<32x128xf32>
    %cst_59 = arith.constant 0.707106769 : f32
    %134 = vector.broadcast %cst_59 : f32 to vector<32x128xf32>
    %135 = arith.mulf %131, %134 : vector<32x128xf32>
    %136 = math.erf %135 : vector<32x128xf32>
    %cst_60 = arith.constant 1.000000e+00 : f32
    %137 = vector.broadcast %cst_60 : f32 to vector<32x128xf32>
    %138 = arith.addf %137, %136 : vector<32x128xf32>
    %139 = arith.mulf %133, %138 : vector<32x128xf32>
    %140 = arith.truncf %139 : vector<32x128xf32> to vector<32x128xbf16>
    %cst_61 = arith.constant dense<0.000000e+00> : vector<32x128xf32>
    %141 = tpu.matmul %140, %10, %cst_61 {dimension_numbers = #tpu.dot_dimension_numbers<[1], [0], [0], [1], [0, 0, 1, 1], [], []>} : vector<32x128xbf16>, vector<128x128xbf16>, vector<32x128xf32> -> vector<32x128xf32>
    %142 = vector.broadcast %11 : vector<1x128xf32> to vector<32x128xf32>
    %143 = arith.addf %141, %142 : vector<32x128xf32>
    %144 = arith.addf %105, %143 : vector<32x128xf32>
    %145 = vector.extract_strided_slice %144 {offsets = [0, 0], sizes = [16, 128], strides = [1, 1]} : vector<32x128xf32> to vector<16x128xf32>
    %c0_62 = arith.constant 0 : index
    %c0_63 = arith.constant 0 : index
    %c0_64 = arith.constant 0 : index
    %146 = vector.load %arg14[%c0_62, %c0_63, %c0_64] : memref<2x16x128xf32, #tpu.memory_space<vmem>>, vector<1x16x128xf32>
    %147 = vector.shape_cast %146 : vector<1x16x128xf32> to vector<16x128xf32>
    %148 = vector.shape_cast %145 : vector<16x128xf32> to vector<1x16x128xf32>
    tpu.vector_store %arg14[%c0_62, %c0_63, %c0_64], %148 {strides = array<i32>} : memref<2x16x128xf32, #tpu.memory_space<vmem>>, vector<1x16x128xf32>,
    %149 = vector.extract_strided_slice %144 {offsets = [16, 0], sizes = [16, 128], strides = [1, 1]} : vector<32x128xf32> to vector<16x128xf32>
    %c1_65 = arith.constant 1 : index
    %c0_66 = arith.constant 0 : index
    %c0_67 = arith.constant 0 : index
    %150 = vector.load %arg14[%c1_65, %c0_66, %c0_67] : memref<2x16x128xf32, #tpu.memory_space<vmem>>, vector<1x16x128xf32>
    %151 = vector.shape_cast %150 : vector<1x16x128xf32> to vector<16x128xf32>
    %152 = vector.shape_cast %149 : vector<16x128xf32> to vector<1x16x128xf32>
    tpu.vector_store %arg14[%c1_65, %c0_66, %c0_67], %152 {strides = array<i32>} : memref<2x16x128xf32, #tpu.memory_space<vmem>>, vector<1x16x128xf32>,
    return
  }
  func.func @transform_0(%arg0: i32) -> (i32, i32, i32) {
    %c0_i32 = arith.constant 0 : i32
    %c0_i32_0 = arith.constant 0 : i32
    %c0_i32_1 = arith.constant 0 : i32
    return %arg0, %c0_i32, %c0_i32_0 : i32, i32, i32
  }
  func.func @transform_1(%arg0: i32) -> (i32, i32) {
    %c0_i32 = arith.constant 0 : i32
    %c0_i32_0 = arith.constant 0 : i32
    %c0_i32_1 = arith.constant 0 : i32
    return %c0_i32, %c0_i32_0 : i32, i32
  }
  func.func @transform_2(%arg0: i32) -> (i32, i32) {
    %c0_i32 = arith.constant 0 : i32
    %c0_i32_0 = arith.constant 0 : i32
    %c0_i32_1 = arith.constant 0 : i32
    return %c0_i32, %c0_i32_0 : i32, i32
  }
  func.func @transform_3(%arg0: i32) -> (i32, i32) {
    %c0_i32 = arith.constant 0 : i32
    %c0_i32_0 = arith.constant 0 : i32
    %c0_i32_1 = arith.constant 0 : i32
    return %c0_i32, %c0_i32_0 : i32, i32
  }
  func.func @transform_4(%arg0: i32) -> (i32, i32) {
    %c0_i32 = arith.constant 0 : i32
    %c0_i32_0 = arith.constant 0 : i32
    %c0_i32_1 = arith.constant 0 : i32
    return %c0_i32, %c0_i32_0 : i32, i32
  }
  func.func @transform_5(%arg0: i32) -> (i32, i32) {
    %c0_i32 = arith.constant 0 : i32
    %c0_i32_0 = arith.constant 0 : i32
    %c0_i32_1 = arith.constant 0 : i32
    return %c0_i32, %c0_i32_0 : i32, i32
  }
  func.func @transform_6(%arg0: i32) -> (i32, i32) {
    %c0_i32 = arith.constant 0 : i32
    %c0_i32_0 = arith.constant 0 : i32
    %c0_i32_1 = arith.constant 0 : i32
    return %c0_i32, %c0_i32_0 : i32, i32
  }
  func.func @transform_7(%arg0: i32) -> (i32, i32) {
    %c0_i32 = arith.constant 0 : i32
    %c0_i32_0 = arith.constant 0 : i32
    %c0_i32_1 = arith.constant 0 : i32
    return %c0_i32, %c0_i32_0 : i32, i32
  }
  func.func @transform_8(%arg0: i32) -> (i32, i32) {
    %c0_i32 = arith.constant 0 : i32
    %c0_i32_0 = arith.constant 0 : i32
    %c0_i32_1 = arith.constant 0 : i32
    return %c0_i32, %c0_i32_0 : i32, i32
  }
  func.func @transform_9(%arg0: i32) -> (i32, i32) {
    %c0_i32 = arith.constant 0 : i32
    %c0_i32_0 = arith.constant 0 : i32
    %c0_i32_1 = arith.constant 0 : i32
    return %c0_i32, %c0_i32_0 : i32, i32
  }
  func.func @transform_10(%arg0: i32) -> (i32, i32) {
    %c0_i32 = arith.constant 0 : i32
    %c0_i32_0 = arith.constant 0 : i32
    %c0_i32_1 = arith.constant 0 : i32
    return %c0_i32, %c0_i32_0 : i32, i32
  }
  func.func @transform_11(%arg0: i32) -> (i32, i32) {
    %c0_i32 = arith.constant 0 : i32
    %c0_i32_0 = arith.constant 0 : i32
    %c0_i32_1 = arith.constant 0 : i32
    return %c0_i32, %c0_i32_0 : i32, i32
  }
  func.func @transform_12(%arg0: i32) -> (i32, i32) {
    %c0_i32 = arith.constant 0 : i32
    %c0_i32_0 = arith.constant 0 : i32
    %c0_i32_1 = arith.constant 0 : i32
    return %c0_i32, %c0_i32_0 : i32, i32
  }
  func.func @transform_13(%arg0: i32) -> (i32, i32, i32) {
    %c0_i32 = arith.constant 0 : i32
    %c0_i32_0 = arith.constant 0 : i32
    %c0_i32_1 = arith.constant 0 : i32
    return %arg0, %c0_i32, %c0_i32_0 : i32, i32, i32
  }
}

</mosaic_0001>

<bundles_post_ra>
// kernel: tpu_custom_call.1
= control target key start
LH: loop header
LB: loop body
LE: loop exit
PB: predicated region body
PF: predicated region fallthrough
CT: control target
= control target key end

     0   :  { %s3760_s0 = inlined_call_operand.hbm [shape: f32[4,16,128], index: 0, kind: input, shape index: {}]   ;;  %s3761_s1 = inlined_call_operand.hbm [shape: f32[1,128], index: 1, kind: input, shape index: {}]   ;;  %s3762_s2 = inlined_call_operand.hbm [shape: f32[1,128], index: 2, kind: input, shape index: {}]   ;;  %s3763_s3 = inlined_call_operand.hbm [shape: bf16[128,16], index: 3, kind: input, shape index: {}]   ;;  %s3764_s4 = inlined_call_operand.hbm [shape: f32[128,1], index: 4, kind: input, shape index: {}]   ;;  %s3765_s5 = inlined_call_operand.hbm [shape: bf16[16,128], index: 5, kind: input, shape index: {}]   ;;  %s3766_s6 = inlined_call_operand.hbm [shape: f32[16,1], index: 6, kind: input, shape index: {}]   ;;  %s3767_s7 = inlined_call_operand.hbm [shape: f32[1,128], index: 7, kind: input, shape index: {}]   ;;  %s3768_s8 = inlined_call_operand.hbm [shape: f32[1,128], index: 8, kind: input, shape index: {}]   ;;  %s3769_s9 = inlined_call_operand.hbm [shape: bf16[128,128], index: 9, kind: input, shape index: {}]   ;;  %s3770_s10 = inlined_call_operand.hbm [shape: f32[1,128], index: 10, kind: input, shape index: {}]   ;;  %s3771_s11 = inlined_call_operand.hbm [shape: bf16[128,128], index: 11, kind: input, shape index: {}]   ;;  %s3772_s12 = inlined_call_operand.hbm [shape: f32[1,128], index: 12, kind: input, shape index: {}]   ;;  %s3773_s13 = inlined_call_operand.hbm [shape: f32[4,16,128], index: 13, kind: output, shape index: {}]  }
   0x1   :  { %3785 = sst [smem:[#allocation35_spill]] %s3760_s0 }
   0x2   :  { %3786 = sst [smem:[#allocation36_spill]] %s3761_s1 }
   0x3   :  { %3787 = sst [smem:[#allocation37_spill]] %s3762_s2 }
   0x4   :  { %3788 = sst [smem:[#allocation38_spill]] %s3763_s3 }
   0x5   :  { %3789 = sst [smem:[#allocation39_spill]] %s3773_s13 }
   0x6   :  { %18 = vsyncpa [#allocation4], 0 }
   0x7   :  { %20 = vsyncpa [#allocation4 + $0x1], 0 }
   0x8   :  { %21 = vsyncpa [#allocation7], 0 }
   0x9   :  { %22 = vsyncpa [#allocation10], 0 }
   0xa   :  { %23 = vsyncpa [#allocation13], 0 }
   0xb   :  { %24 = vsyncpa [#allocation16], 0 }
   0xc   :  { %25 = vsyncpa [#allocation19], 0 }
   0xd   :  { %26 = vsyncpa [#allocation22], 0 }
   0xe   :  { %27 = vsyncpa [#allocation5], 0 }
   0xf   :  { %29 = vsyncpa [#allocation5 + $0x1], 0  ;;  %s3039_s25 = smov 0   ;;  %s3041_s26 = smov 0  }
  0x10   :  { %s3043_s27 = smov 0   ;;  %s3045_s28 = smov 0  }
  0x11 LB: > { %s2946_s29 = smov [#allocation6]   ;;  %s3060_s14 = sadd.s32 4294967295, %s2944_s28   ;;  %s2944_s28 = sphi %s3045_s28, %s3830_s28   ;;  %s2940_s27 = sphi %s3043_s27, %s3829_s27   ;;  %s2936_s26 = sphi %s3041_s26, %s3828_s26   ;;  %s2932_s25 = sphi %s3039_s25, %s3827_s25  }
  0x12   : > { %s357_s30 = sshll.u32 %s2946_s29, 4  ;;  %3790 = sst [smem:[#allocation33_spill]] %s3060_s14  ;;  %s3065_s30 = int_to_ptr.vmem [resolvable:$true] %s357_s30 }
  0x13   : > { %p1926_p0 = scmp.ge.s32.totalorder %s2944_s28, 1  ;;  %p3780_p1 = scmp.eq.s32.totalorder %s3060_s14, 0 }
  0x14   : > { %p344_p2 = scmp.lt.s32.totalorder %s2944_s28, 3  ;;  %s2947_s16 = smov [#allocation9]  }
  0x15   : > { %s378_s17 = sshll.u32 %s2947_s16, 4  ;;  %s2948_s19 = smov [#allocation12]   ;;  %s3074_s17 = int_to_ptr.vmem [resolvable:$true] %s378_s17 }
  0x16   : > { %p3067_p3 = pnand %p1926_p0, %p344_p2  ;;  %s404_s20 = sshll.u32 %s2948_s19, 4  ;;  %s3082_s20 = int_to_ptr.vmem [resolvable:$true] %s404_s20 }
  0x17   : > { %s3794_s1 = sld [smem:[#allocation36_spill]] }
  0x18   : > { %s3791_s15 = scalar_select %p3067_p3, 1, 0 }
  0x19   : > { %p2245_p5 = pneg %p3067_p3 }
  0x1a   : > { %3792 = sst [smem:[#allocation34_spill]] %s3791_s15 }
  0x1b   : > { %p3078_p6 = pnand %p2245_p5, %p3780_p1 }
  0x1d   : > { %s2488_s23 = scalar_lea.hbm %s3794_s1, 16  ;;  %p3092_p8 = pneg %p3078_p6 }
  0x1e   : > { %p2489_p7 = scmp.ne.s32.totalorder %s3794_s1, %s2488_s23  ;;  %p2495_p11 = scmp.lt.u32.totalorder %s2488_s23, %s3794_s1 }
  0x20   : > { %p2491_p9 = pnand %p3092_p8, %p2489_p7 }
  0x22   : > { %p2492_p10 = pneg %p2491_p9 }
  0x24   : > { %p2497_p12 = pnand %p2495_p11, %p2492_p10 }
  0x26   : > { %2500 = shalt.err (!%p2497_p12)
}
  0x27   : > { %s2501_s21 = scalar_lea.vmem %s3065_s30, 16  ;;  %s2508_s22 = scalar_lea.vmem %s3065_s30, 32 }
  0x28   : > { %p2502_p13 = scmp.ne.s32.totalorder %s3065_s30, %s2501_s21  ;;  %p2509_p5 = scmp.lt.s32.totalorder %s3065_s30, %s3065_s30 }
  0x29   : > { %p2510_p7 = scmp.lt.s32.totalorder %s2508_s22, %s2501_s21 }
  0x2a   : > { %p2504_p0 = pnand %p2502_p13, %p3092_p8 }
  0x2b   : > { %p2511_p9 = por %p2510_p7, %p2509_p5 }
  0x2c   : > { %p2505_p2 = pneg %p2504_p0 }
  0x2e   : > { %p2512_p4 = pnand %p2511_p9, %p2505_p2 }
  0x30   : > { %2515 = shalt.err (!%p2512_p4)
}
  0x31   : > { %2248 = dma.hbm_to_vmem [thread:$0]  (!%p3078_p6), %s3794_s1, 16, %s3065_s30, [#allocation7]  }
  0x32   : > { %s3796_s3 = sld [smem:[#allocation38_spill]] }
  0x38   : > { %s2516_s19 = scalar_lea.hbm %s3796_s3, 1024 }
  0x39   : > { %p2517_p10 = scmp.ne.s32.totalorder %s3796_s3, %s2516_s19  ;;  %p2523_p4 = scmp.lt.u32.totalorder %s2516_s19, %s3796_s3 }
  0x3b   : > { %p2519_p11 = pnand %p2517_p10, %p3092_p8 }
  0x3d   : > { %p2520_p12 = pneg %p2519_p11 }
  0x3f   : > { %p2525_p13 = pnand %p2523_p4, %p2520_p12 }
  0x41   : > { %2528 = shalt.err (!%p2525_p13)
}
  0x42   : > { %s2529_s30 = scalar_lea.vmem %s3074_s17, 1024  ;;  %p2537_p7 = scmp.lt.s32.totalorder %s3074_s17, %s3074_s17 }
  0x43   : > { %p2530_p0 = scmp.ne.s32.totalorder %s3074_s17, %s2529_s30  ;;  %p2538_p9 = scmp.lt.s32.totalorder %s2529_s30, %s2529_s30 }
  0x45   : > { %p2532_p2 = pnand %p2530_p0, %p3092_p8  ;;  %p2539_p10 = por %p2538_p9, %p2537_p7 }
  0x47   : > { %p2533_p5 = pneg %p2532_p2 }
  0x49   : > { %p2540_p11 = pnand %p2539_p10, %p2533_p5 }
  0x4b   : > { %2543 = shalt.err (!%p2540_p11)
}
  0x4c   : > { %s2949_s0 = smov 64   ;;  %s2950_s15 = smov 4  }
  0x4d   : > { %2254 = dma.hbm_to_vmem [thread:$0]  (!%p3078_p6), %s3796_s3, 1024, %s3074_s17, [#allocation10], %s2949_s0, %s2949_s0, %s2950_s15  }
  0x4e   : > { %s2544_s19 = scalar_lea.hbm %s3765_s5, 128 }
  0x4f   : > { %p2545_p12 = scmp.ne.s32.totalorder %s3765_s5, %s2544_s19  ;;  %p2551_p0 = scmp.lt.u32.totalorder %s2544_s19, %s3765_s5 }
  0x51   : > { %p2547_p4 = pnand %p2545_p12, %p3092_p8 }
  0x53   : > { %p2548_p13 = pneg %p2547_p4 }
  0x55   : > { %p2553_p2 = pnand %p2551_p0, %p2548_p13 }
  0x57   : > { %2556 = shalt.err (!%p2553_p2)
}
  0x58   : > { %s2557_s17 = scalar_lea.vmem %s3082_s20, 128  ;;  %p2565_p10 = scmp.lt.s32.totalorder %s3082_s20, %s3082_s20 }
  0x59   : > { %p2558_p5 = scmp.ne.s32.totalorder %s3082_s20, %s2557_s17  ;;  %p2566_p11 = scmp.lt.s32.totalorder %s2557_s17, %s2557_s17 }
  0x5b   : > { %p2560_p7 = pnand %p2558_p5, %p3092_p8  ;;  %p2567_p12 = por %p2566_p11, %p2565_p10 }
  0x5d   : > { %p2561_p9 = pneg %p2560_p7 }
  0x5f   : > { %p2568_p4 = pnand %p2567_p12, %p2561_p9 }
  0x61   : > { %2571 = shalt.err (!%p2568_p4)
}
  0x62   : > { %2260 = dma.hbm_to_vmem [thread:$0]  (!%p3078_p6), %s3765_s5, 128, %s3082_s20, [#allocation13], %s2949_s0, %s2949_s0, %s2950_s15  }
  0x63   : > { %s2951_s23 = smov [#allocation15]   ;;  %s2952_s29 = smov [#allocation18]  }
  0x64   : > { %s431_s24 = sshll.u32 %s2951_s23, 4  ;;  %s452_s19 = sshll.u32 %s2952_s29, 4  ;;  %s432_s24 = int_to_ptr.vmem [resolvable:$true] %s431_s24  ;;  %s453_s19 = int_to_ptr.vmem [resolvable:$true] %s452_s19 }
  0x65   : > { %s2572_s30 = scalar_lea.hbm %s3767_s7, 16 }
  0x66   : > { %p2573_p13 = scmp.ne.s32.totalorder %s3767_s7, %s2572_s30  ;;  %p2579_p5 = scmp.lt.u32.totalorder %s2572_s30, %s3767_s7 }
  0x68   : > { %p2575_p0 = pnand %p2573_p13, %p3092_p8 }
  0x6a   : > { %p2576_p2 = pneg %p2575_p0 }
  0x6c   : > { %p2581_p7 = pnand %p2579_p5, %p2576_p2 }
  0x6e   : > { %2584 = shalt.err (!%p2581_p7)
}
  0x6f   : > { %s2585_s20 = scalar_lea.vmem %s432_s24, 16  ;;  %s2592_s13 = scalar_lea.vmem %s432_s24, 32 }
  0x70   : > { %p2586_p9 = scmp.ne.s32.totalorder %s432_s24, %s2585_s20  ;;  %p2593_p12 = scmp.lt.s32.totalorder %s432_s24, %s432_s24 }
  0x71   : > { %p2594_p4 = scmp.lt.s32.totalorder %s2592_s13, %s2585_s20 }
  0x72   : > { %p2588_p10 = pnand %p2586_p9, %p3092_p8 }
  0x73   : > { %p2595_p1 = por %p2594_p4, %p2593_p12 }
  0x74   : > { %p2589_p11 = pneg %p2588_p10 }
  0x76   : > { %p2596_p3 = pnand %p2595_p1, %p2589_p11 }
  0x78   : > { %2599 = shalt.err (!%p2596_p3)
}
  0x79   : > { %2266 = dma.hbm_to_vmem [thread:$0]  (!%p3078_p6), %s3767_s7, 16, %s432_s24, [#allocation16]  }
  0x7a   : > { %s2600_s21 = scalar_lea.hbm %s3769_s9, 1024 }
  0x7b   : > { %p2601_p13 = scmp.ne.s32.totalorder %s3769_s9, %s2600_s21  ;;  %p2607_p3 = scmp.lt.u32.totalorder %s2600_s21, %s3769_s9 }
  0x7d   : > { %p2603_p0 = pnand %p2601_p13, %p3092_p8 }
  0x7f   : > { %p2604_p1 = pneg %p2603_p0 }
  0x81   : > { %p2609_p2 = pnand %p2607_p3, %p2604_p1 }
  0x83   : > { %2612 = shalt.err (!%p2609_p2)
}
  0x84   : > { %s2613_s20 = scalar_lea.vmem %s453_s19, 1024  ;;  %p2621_p10 = scmp.lt.s32.totalorder %s453_s19, %s453_s19 }
  0x85   : > { %p2614_p5 = scmp.ne.s32.totalorder %s453_s19, %s2613_s20  ;;  %p2622_p11 = scmp.lt.s32.totalorder %s2613_s20, %s2613_s20 }
  0x87   : > { %p2616_p7 = pnand %p2614_p5, %p3092_p8  ;;  %p2623_p12 = por %p2622_p11, %p2621_p10 }
  0x89   : > { %p2617_p9 = pneg %p2616_p7 }
  0x8b   : > { %p2624_p4 = pnand %p2623_p12, %p2617_p9 }
  0x8d   : > { %2627 = shalt.err (!%p2624_p4)
}
  0x8e   : > { %2272 = dma.hbm_to_vmem [thread:$0]  (!%p3078_p6), %s3769_s9, 1024, %s453_s19, [#allocation19], %s2949_s0, %s2949_s0, %s2950_s15  }
  0x8f   : > { %s2953_s3 = smov [#allocation21]   ;;  %s2954_s14 = smov [#allocation8]  }
  0x90   : > { %s476_s23 = sshll.u32 %s2953_s3, 4  ;;  %s368_s29 = sshll.u32 %s2954_s14, 4  ;;  %s477_s23 = int_to_ptr.vmem [resolvable:$true] %s476_s23  ;;  %s369_s29 = int_to_ptr.vmem [resolvable:$true] %s368_s29 }
  0x91   : > { %s2628_s30 = scalar_lea.hbm %s3771_s11, 1024 }
  0x92   : > { %p2629_p13 = scmp.ne.s32.totalorder %s3771_s11, %s2628_s30  ;;  %p2635_p3 = scmp.lt.u32.totalorder %s2628_s30, %s3771_s11 }
  0x94   : > { %p2631_p0 = pnand %p2629_p13, %p3092_p8 }
  0x96   : > { %p2632_p1 = pneg %p2631_p0 }
  0x98   : > { %p2637_p2 = pnand %p2635_p3, %p2632_p1 }
  0x9a   : > { %2640 = shalt.err (!%p2637_p2)
}
  0x9b   : > { %s2641_s19 = scalar_lea.vmem %s477_s23, 1024  ;;  %p2649_p10 = scmp.lt.s32.totalorder %s477_s23, %s477_s23 }
  0x9c   : > { %p2642_p5 = scmp.ne.s32.totalorder %s477_s23, %s2641_s19  ;;  %p2650_p11 = scmp.lt.s32.totalorder %s2641_s19, %s2641_s19 }
  0x9e   : > { %p2644_p7 = pnand %p2642_p5, %p3092_p8  ;;  %p2651_p12 = por %p2650_p11, %p2649_p10 }
  0xa0   : > { %p2645_p9 = pneg %p2644_p7 }
  0xa2   : > { %p2652_p4 = pnand %p2651_p12, %p2645_p9 }
  0xa4   : > { %2655 = shalt.err (!%p2652_p4)
}
  0xa5   : > { %2278 = dma.hbm_to_vmem [thread:$0]  (!%p3078_p6), %s3771_s11, 1024, %s477_s23, [#allocation22], %s2949_s0, %s2949_s0, %s2950_s15  }
  0xa6   : > { %s3797_s2 = sld [smem:[#allocation37_spill]] }
  0xac   : > { %s2656_s22 = scalar_lea.hbm %s3797_s2, 16 }
  0xad   : > { %p2657_p13 = scmp.ne.s32.totalorder %s3797_s2, %s2656_s22  ;;  %p2663_p3 = scmp.lt.u32.totalorder %s2656_s22, %s3797_s2 }
  0xaf   : > { %p2659_p0 = pnand %p2657_p13, %p3092_p8 }
  0xb1   : > { %p2660_p1 = pneg %p2659_p0 }
  0xb3   : > { %p2665_p2 = pnand %p2663_p3, %p2660_p1 }
  0xb5   : > { %2668 = shalt.err (!%p2665_p2)
}
  0xb6   : > { %s2669_s24 = scalar_lea.vmem %s369_s29, 16  ;;  %s2676_s0 = scalar_lea.vmem %s369_s29, 32 }
  0xb7   : > { %p2670_p5 = scmp.ne.s32.totalorder %s369_s29, %s2669_s24  ;;  %p2677_p10 = scmp.lt.s32.totalorder %s369_s29, %s369_s29 }
  0xb8   : > { %p2678_p11 = scmp.lt.s32.totalorder %s2676_s0, %s2669_s24 }
  0xb9   : > { %p2672_p7 = pnand %p2670_p5, %p3092_p8 }
  0xba   : > { %p2679_p12 = por %p2678_p11, %p2677_p10 }
  0xbb   : > { %p2673_p9 = pneg %p2672_p7 }
  0xbd   : > { %p2680_p4 = pnand %p2679_p12, %p2673_p9 }
  0xbf   : > { %2683 = shalt.err (!%p2680_p4)
}
  0xc0   : > { %2251 = dma.hbm_to_vmem [thread:$0]  (!%p3078_p6), %s3797_s2, 16, %s369_s29, [#allocation7]  }
  0xc1   : > { %s2955_s19 = smov [#allocation11]   ;;  %s2684_s21 = scalar_lea.hbm %s3764_s4, 2048 }
  0xc2   : > { %s391_s13 = sshll.u32 %s2955_s19, 4  ;;  %p2685_p13 = scmp.ne.s32.totalorder %s3764_s4, %s2684_s21  ;;  %s392_s13 = int_to_ptr.vmem [resolvable:$true] %s391_s13 }
  0xc3   : > { %p2691_p3 = scmp.lt.u32.totalorder %s2684_s21, %s3764_s4 }
  0xc4   : > { %p2687_p0 = pnand %p2685_p13, %p3092_p8 }
  0xc6   : > { %p2688_p1 = pneg %p2687_p0 }
  0xc8   : > { %p2693_p2 = pnand %p2691_p3, %p2688_p1 }
  0xca   : > { %2696 = shalt.err (!%p2693_p2)
}
  0xcb   : > { %s2697_s29 = scalar_lea.vmem %s392_s13, 2048  ;;  %p2705_p10 = scmp.lt.s32.totalorder %s392_s13, %s392_s13 }
  0xcc   : > { %p2698_p5 = scmp.ne.s32.totalorder %s392_s13, %s2697_s29  ;;  %p2706_p11 = scmp.lt.s32.totalorder %s2697_s29, %s2697_s29 }
  0xce   : > { %p2700_p7 = pnand %p2698_p5, %p3092_p8  ;;  %p2707_p12 = por %p2706_p11, %p2705_p10 }
  0xd0   : > { %p2701_p9 = pneg %p2700_p7 }
  0xd2   : > { %p2708_p4 = pnand %p2707_p12, %p2701_p9 }
  0xd4   : > { %2711 = shalt.err (!%p2708_p4)
}
  0xd5   : > { %s3782_s20 = smov 128   ;;  %s3783_s24 = smov 8  }
  0xd6   : > { %2257 = dma.hbm_to_vmem [thread:$0]  (!%p3078_p6), %s3764_s4, 2048, %s392_s13, [#allocation10], %s3782_s20, %s3782_s20, %s3783_s24  }
  0xd7   : > { %s2958_s23 = smov [#allocation14]   ;;  %s2959_s3 = smov [#allocation17]  }
  0xd8   : > { %s417_s19 = sshll.u32 %s2958_s23, 4  ;;  %s442_s14 = sshll.u32 %s2959_s3, 4  ;;  %s418_s19 = int_to_ptr.vmem [resolvable:$true] %s417_s19  ;;  %s3265_s14 = int_to_ptr.vmem [resolvable:$true] %s442_s14 }
  0xd9   : > { %s2712_s30 = scalar_lea.hbm %s3766_s6, 256 }
  0xda   : > { %p2713_p13 = scmp.ne.s32.totalorder %s3766_s6, %s2712_s30  ;;  %p2719_p3 = scmp.lt.u32.totalorder %s2712_s30, %s3766_s6 }
  0xdc   : > { %p2715_p0 = pnand %p2713_p13, %p3092_p8 }
  0xde   : > { %p2716_p1 = pneg %p2715_p0 }
  0xe0   : > { %p2721_p2 = pnand %p2719_p3, %p2716_p1 }
  0xe2   : > { %2724 = shalt.err (!%p2721_p2)
}
  0xe3   : > { %s2725_s0 = scalar_lea.vmem %s418_s19, 256  ;;  %p2733_p10 = scmp.lt.s32.totalorder %s418_s19, %s418_s19 }
  0xe4   : > { %p2726_p5 = scmp.ne.s32.totalorder %s418_s19, %s2725_s0  ;;  %p2734_p11 = scmp.lt.s32.totalorder %s2725_s0, %s2725_s0 }
  0xe6   : > { %p2728_p7 = pnand %p2726_p5, %p3092_p8  ;;  %p2735_p12 = por %p2734_p11, %p2733_p10 }
  0xe8   : > { %p2729_p9 = pneg %p2728_p7 }
  0xea   : > { %p2736_p4 = pnand %p2735_p12, %p2729_p9 }
  0xec   : > { %2739 = shalt.err (!%p2736_p4)
}
  0xed   : > { %2263 = dma.hbm_to_vmem [thread:$0]  (!%p3078_p6), %s3766_s6, 256, %s418_s19, [#allocation13], %s3782_s20, %s3782_s20, %s3783_s24  }
  0xee   : > { %s2740_s22 = scalar_lea.hbm %s3768_s8, 16 }
  0xef   : > { %p2741_p13 = scmp.ne.s32.totalorder %s3768_s8, %s2740_s22  ;;  %p2747_p3 = scmp.lt.u32.totalorder %s2740_s22, %s3768_s8 }
  0xf1   : > { %p2743_p0 = pnand %p2741_p13, %p3092_p8 }
  0xf3   : > { %p2744_p1 = pneg %p2743_p0 }
  0xf5   : > { %p2749_p2 = pnand %p2747_p3, %p2744_p1 }
  0xf7   : > { %2752 = shalt.err (!%p2749_p2)
}
  0xf8   : > { %s2753_s19 = scalar_lea.vmem %s3265_s14, 16  ;;  %s2760_s13 = scalar_lea.vmem %s3265_s14, 32 }
  0xf9   : > { %p2754_p5 = scmp.ne.s32.totalorder %s3265_s14, %s2753_s19  ;;  %p2761_p10 = scmp.lt.s32.totalorder %s3265_s14, %s3265_s14 }
  0xfa   : > { %p2762_p11 = scmp.lt.s32.totalorder %s2760_s13, %s2753_s19 }
  0xfb   : > { %p2756_p7 = pnand %p2754_p5, %p3092_p8 }
  0xfc   : > { %p2763_p12 = por %p2762_p11, %p2761_p10 }
  0xfd   : > { %p2757_p9 = pneg %p2756_p7 }
  0xff   : > { %p2764_p4 = pnand %p2763_p12, %p2757_p9 }
 0x101   : > { %2767 = shalt.err (!%p2764_p4)
}
 0x102   : > { %2269 = dma.hbm_to_vmem [thread:$0]  (!%p3078_p6), %s3768_s8, 16, %s3265_s14, [#allocation16]  }
 0x103   : > { %s2960_s23 = smov [#allocation20]   ;;  %s2961_s21 = smov [#allocation23]  }
 0x104   : > { %s466_s3 = sshll.u32 %s2960_s23, 4  ;;  %s490_s22 = sshll.u32 %s2961_s21, 4  ;;  %s467_s3 = int_to_ptr.vmem [resolvable:$true] %s466_s3  ;;  %s3312_s22 = int_to_ptr.vmem [resolvable:$true] %s490_s22 }
 0x105   : > { %s2768_s1 = scalar_lea.hbm %s3770_s10, 16 }
 0x106   : > { %p2769_p13 = scmp.ne.s32.totalorder %s3770_s10, %s2768_s1  ;;  %p2775_p3 = scmp.lt.u32.totalorder %s2768_s1, %s3770_s10 }
 0x108   : > { %p2771_p0 = pnand %p2769_p13, %p3092_p8 }
 0x10a   : > { %p2772_p1 = pneg %p2771_p0 }
 0x10c   : > { %p2777_p2 = pnand %p2775_p3, %p2772_p1 }
 0x10e   : > { %2780 = shalt.err (!%p2777_p2)
}
 0x10f   : > { %s2781_s0 = scalar_lea.vmem %s467_s3, 16  ;;  %s2788_s15 = scalar_lea.vmem %s467_s3, 32 }
 0x110   : > { %p2782_p5 = scmp.ne.s32.totalorder %s467_s3, %s2781_s0  ;;  %p2789_p10 = scmp.lt.s32.totalorder %s467_s3, %s467_s3 }
 0x111   : > { %p2790_p11 = scmp.lt.s32.totalorder %s2788_s15, %s2781_s0 }
 0x112   : > { %p2784_p7 = pnand %p2782_p5, %p3092_p8 }
 0x113   : > { %p2791_p12 = por %p2790_p11, %p2789_p10 }
 0x114   : > { %p2785_p9 = pneg %p2784_p7 }
 0x116   : > { %p2792_p4 = pnand %p2791_p12, %p2785_p9 }
 0x118   : > { %2795 = shalt.err (!%p2792_p4)
}
 0x119   : > { %2275 = dma.hbm_to_vmem [thread:$0]  (!%p3078_p6), %s3770_s10, 16, %s467_s3, [#allocation19]  }
 0x11a   : > { %s2796_s1 = scalar_lea.hbm %s3772_s12, 16 }
 0x11b   : > { %p2797_p13 = scmp.ne.s32.totalorder %s3772_s12, %s2796_s1  ;;  %p2803_p3 = scmp.lt.u32.totalorder %s2796_s1, %s3772_s12 }
 0x11d   : > { %p2799_p0 = pnand %p2797_p13, %p3092_p8 }
 0x11f   : > { %p2800_p1 = pneg %p2799_p0 }
 0x121   : > { %p2805_p2 = pnand %p2803_p3, %p2800_p1 }
 0x123   : > { %2808 = shalt.err (!%p2805_p2)
}
 0x124   : > { %s2809_s3 = scalar_lea.vmem %s3312_s22, 16  ;;  %s2816_s0 = scalar_lea.vmem %s3312_s22, 32 }
 0x125   : > { %p2810_p5 = scmp.ne.s32.totalorder %s3312_s22, %s2809_s3  ;;  %p2817_p10 = scmp.lt.s32.totalorder %s3312_s22, %s3312_s22 }
 0x126   : > { %p2818_p11 = scmp.lt.s32.totalorder %s2816_s0, %s2809_s3 }
 0x127   : > { %p2812_p7 = pnand %p2810_p5, %p3092_p8 }
 0x128   : > { %p2819_p12 = por %p2818_p11, %p2817_p10 }
 0x129   : > { %p2813_p9 = pneg %p2812_p7 }
 0x12b   : > { %p2820_p4 = pnand %p2819_p12, %p2813_p9 }
 0x12d   : > { %2823 = shalt.err (!%p2820_p4)
}
 0x12e   : > { %s3798_s16 = sld [smem:[#allocation33_spill]]  ;;  %s1925_s18 = sadd.s32 4294967294, %s2944_s28  }
 0x12f   : > { %2281 = dma.hbm_to_vmem [thread:$0]  (!%p3078_p6), %s3772_s12, 16, %s3312_s22, [#allocation22]  }
 0x130   : > { %s3358_s21 = sadd.s32 1, %s2944_s28   ;;  %s42_s17 = sadd.s32 1, %s2940_s27 }
 0x131   : > { %s39_s30 = ssub.s32 %s2944_s28, %s3358_s21  ;;  %p49_p13 = scmp.ne.s32.totalorder %s2940_s27, %s2936_s26 }
 0x132   : > { %p40_p8 = scmp.eq.s32.totalorder %s39_s30, 0  ;;  %p50_p0 = scmp.eq.s32.totalorder %s2944_s28, 0 }
 0x133   : > { %p55_p1 = scmp.ne.s32.totalorder %s2936_s26, %s2932_s25  ;;  %p337_p7 = scmp.eq.s32.totalorder %s1925_s18, 1 }
 0x134   : > { %s3369_s1 = scalar_select %p40_p8, %s2940_s27, %s42_s17  }
 0x135   : > { %p3371_p3 = por %p50_p0, %p49_p13  ;;  %p3800_p2 = scmp.eq.s32.totalorder %s3798_s16, 0 }
 0x136   : > { %p331_p5 = scmp.eq.s32.totalorder %s3798_s16, 1  ;;  %p2302_p9 = scmp.lt.s32.totalorder %s2944_s28, 2 }
 0x137   : > { %p3377_p6 = por %p3800_p2, %p55_p1  ;;  %s501_s19 = sand.u32 1, %s2940_s27  }
 0x138   : > { %p3384_p10 = por %p331_p5, %p49_p13  ;;  %p3388_p11 = por %p337_p7, %p55_p1 }
 0x139   : > { %s1940_s3 = sshll.u32 %s501_s19, 5  ;;  %s2018_s0 = sshll.u32 %s2944_s28, 9 }
 0x13a   : > { %s3802_s13 = scalar_select %p3384_p10, 1, 0 }
 0x13b   : > { %s3803_s14 = scalar_select %p3388_p11, 1, 0 }
 0x13c   : > { %s3804_s30 = sld [smem:[#allocation35_spill]]  ;;  %s505_s16 = scalar_lea.vmem [#allocation3], %s1940_s3 }
 0x13d   : > { %s513_s18 = sshll.u32 %s505_s16, 4  ;;  %p3402_p12 = pnand %p2302_p9, %p3371_p3  ;;  %s3398_s18 = int_to_ptr.vmem [resolvable:$true] %s513_s18 }
 0x13e   : > { %s3406_s24 = scalar_lea.sflag [#allocation4], %s501_s19 }
 0x13f   : > { %p2826_p8 = pneg %p3402_p12 }
 0x142   : > { %s3396_s17 = scalar_lea.hbm %s3804_s30, %s2018_s0  ;;  %s2829_s29 = scalar_lea.hbm %s3804_s30, 1024 }
 0x143   : > { %s2824_s15 = scalar_lea.hbm %s3396_s17, 512  ;;  %p2830_p1 = scmp.lt.u32.totalorder %s3396_s17, %s3804_s30 }
 0x144   : > { %p2825_p4 = scmp.ne.s32.totalorder %s3396_s17, %s2824_s15  ;;  %p2831_p3 = scmp.lt.u32.totalorder %s2829_s29, %s2824_s15 }
 0x145   : > { %p2833_p5 = scmp.lt.u32.totalorder %s2824_s15, %s3396_s17 }
 0x146   : > { %p2827_p13 = pnand %p2826_p8, %p2825_p4  ;;  %p2832_p2 = por %p2831_p3, %p2830_p1 }
 0x148   : > { %p2828_p0 = pneg %p2827_p13  ;;  %p2834_p7 = por %p2833_p5, %p2832_p2 }
 0x14a   : > { %p2835_p9 = pnand %p2834_p7, %p2828_p0 }
 0x14c   : > { %2838 = shalt.err (!%p2835_p9)
}
 0x14d   : > { %s2839_s19 = scalar_lea.vmem %s3398_s18, 512  ;;  %s2962_s3 = smov [#allocation3]  }
 0x14e   : > { %p2840_p4 = scmp.ne.s32.totalorder %s3398_s18, %s2839_s19  ;;  %s2844_s0 = sshll.u32 %s2962_s3, 4  ;;  %s2845_s0 = int_to_ptr.vmem [resolvable:$false] %s2844_s0 }
 0x14f   : > { %s2846_s23 = scalar_lea.vmem %s2845_s0, 1024  ;;  %p2847_p10 = scmp.lt.s32.totalorder %s3398_s18, %s2845_s0 }
 0x150   : > { %p2842_p13 = pnand %p2840_p4, %p2826_p8  ;;  %p2848_p1 = scmp.lt.s32.totalorder %s2846_s23, %s2839_s19 }
 0x152   : > { %p2843_p11 = pneg %p2842_p13  ;;  %p2849_p3 = por %p2848_p1, %p2847_p10 }
 0x154   : > { %p2850_p2 = pnand %p2849_p3, %p2843_p11 }
 0x156   : > { %2853 = shalt.err (!%p2850_p2)
}
 0x157   : > { %s3806_s15 = smov 8   ;;  %s3807_s29 = smov 128  }
 0x158   : > { %2285 = dma.hbm_to_vmem [thread:$0]  (!%p3402_p12), %s3396_s17, 512, %s3398_s18, %s3406_s24, %s3807_s29, %s3807_s29, %s3806_s15  }
 0x159   : > { %s3808_s16 = sld [smem:[#allocation34_spill]] }
 0x15f   : > { %p3809_p8 = scmp.ne.s32.totalorder %s3808_s16, 0 }
 0x160   : > { %s3440_s3 = sand.u32 (!%p3809_p8), 1, %s2936_s26  }
 0x161   : > { %525 = sbr.rel (%p3809_p8) target bundleno = 1715 (0x6b3), region = 72  ;;  %s1945_s19 = sshll.u32 (!%p3809_p8), %s3440_s3, 5 }
 0x162   : > { %s528_s0 = scalar_lea.sflag (!%p3809_p8), [#allocation4], %s3440_s3  ;;  %s3446_s20 = scalar_lea.vmem (!%p3809_p8), [#allocation3], %s1945_s19 }
 0x168   : > { %2899 = dma.done.wait (%p3377_p6), %s528_s0, 512  }
 0x169   : > { %2901 = vsyncadd (%p3377_p6), %s528_s0, 4294966784  ;;  %s3810_s24 = sld [smem:[#allocation33_spill]] }
 0x16f   : > { %p3811_p10 = scmp.eq.s32.totalorder %s3810_s24, 0 }
 0x171   : > { %2903 = dma.done.wait (%p3811_p10), [#allocation7], 32   ;;  %p3812_p11 = pmov %p3811_p10 }
 0x172   : > { %p3813_p12 = pmov %p3811_p10 }
 0x173   : > { %2905 = vsyncadd (%p3812_p11), [#allocation7], 4294967264 }
 0x174   : > { %2907 = dma.done.wait (%p3813_p12), [#allocation10], 3072   ;;  %p3814_p0 = pmov %p3811_p10 }
 0x176   : > { %2909 = vsyncadd (%p3814_p0), [#allocation10], 4294964224  ;;  %p3815_p5 = pmov %p3814_p0 }
 0x177   : > { %p3816_p7 = pmov %p3814_p0 }
 0x178   : > { %2911 = dma.done.wait (%p3815_p5), [#allocation13], 384  }
 0x179   : > { %2913 = vsyncadd (%p3816_p7), [#allocation13], 4294966912  ;;  %p3817_p6 = pmov %p3814_p0 }
 0x17a   : > { %p3818_p9 = pmov %p3814_p0 }
 0x17b   : > { %2915 = dma.done.wait (%p3817_p6), [#allocation16], 32  }
 0x17c   : > { %2917 = vsyncadd (%p3818_p9), [#allocation16], 4294967264  ;;  %p3819_p4 = pmov %p3814_p0 }
 0x17d   : > { %p3820_p13 = pmov %p3814_p0 }
 0x17e   : > { %2919 = dma.done.wait (%p3819_p4), [#allocation19], 1040  }
 0x17f   : > { %2921 = vsyncadd (%p3820_p13), [#allocation19], 4294966256  ;;  %p3821_p1 = pmov %p3814_p0 }
 0x180   : > { %p3822_p3 = pmov %p3814_p0 }
 0x181   : > { %2923 = dma.done.wait (%p3821_p1), [#allocation22], 1040  }
 0x182   : > { %2925 = vsyncadd (%p3822_p3), [#allocation22], 4294966256  ;;  %v3477_v0 = vld [vmem:[%s3446_s20 + $0x10] sm:$0xff]  ;;  %v3480_v1 = vld [vmem:[%s3446_s20] sm:$0xff]  ;;  %vm869_vm0 = vcmask 130048   ;;  %v2963_v10 = vmov 0  }
 0x183   : > { %v3483_v2 = vld [vmem:[%s3446_s20 + $0x18] sm:$0xff]  ;;  %1145 = vadd.xlane.f32.xlu1 %v3477_v0  ;;  %706 = vadd.xlane.f32.xlu0 %v3480_v1  ;;  %v3488_v3 = vld [vmem:[%s3446_s20 + $0x8] sm:$0xff]  ;;  %v712_v5 = vmul.f32 %v3480_v1, %v3480_v1  ;;  %v1151_v7 = vmul.f32 %v3477_v0, %v3477_v0  ;;  %v1960_v59 = vld [vmem:[#allocation6] ss:$0 sm:$0xff]  ;;  %vm2965_vm1 = vmmov 0   ;;  %s621_s22 = scalar_lea.vmem [#allocation24], %s1945_s19 }
 0x184   : > { %v713_v4 = vmul.f32 %v3488_v3, %v3488_v3  ;;  %v1152_v6 = vmul.f32 %v3483_v2, %v3483_v2  ;;  %v2371_v8 = vld [vmem:[#allocation9] sm:$0xff]   ;;  %v646_v9 = vld [vmem:[#allocation11 + $0x8] sm:$0xff]  ;;  %2370 = vset.pattern.permute.xlu1 %v2963_v10  ;;  %2369 = vset.pattern.permute.xlu0 %v2963_v10  ;;  %v647_v11 = vld [vmem:[#allocation11 + $0x10] sm:$0xff]  ;;  %s1738_s17 = sshll.u32 %s621_s22, 4  ;;  %s2020_s18 = sshll.u32 %s3810_s24, 9  ;;  %s3708_s17 = int_to_ptr.vmem [resolvable:$true] %s1738_s17 }
 0x185   : > { %2079 = vmatprep.mubr.msk.bf16.mxu0 %vm869_vm0, %v2371_v8  ;;  %2117 = vmatprep.mubr.msk.bf16.mxu1 %vm869_vm0, %v2371_v8  ;;  %v645_v12 = vld [vmem:[#allocation11] sm:$0xff]  ;;  %v654_v13 = vld [vmem:[#allocation11 + $0x48] sm:$0xff]  ;;  %v648_v14 = vld [vmem:[#allocation11 + $0x18] sm:$0xff]  ;;  %s3823_s29 = sld [smem:[#allocation39_spill]]  ;;  %s1724_s19 = scalar_lea.sflag [#allocation5], %s3440_s3 }
 0x186   : > { %v656_v15 = vld [vmem:[#allocation11 + $0x58] sm:$0xff]  ;;  %v649_v16 = vld [vmem:[#allocation11 + $0x20] sm:$0xff]  ;;  %v658_v17 = vld [vmem:[#allocation11 + $0x68] sm:$0xff]  ;;  %s2854_s0 = scalar_lea.vmem %s3708_s17, 512  ;;  %p3824_p8 = scmp.ne.s32.totalorder %s3802_s13, 0 }
 0x187   : > { %1147 = vadd.xlane.f32.xlu1 %v3483_v2  ;;  %708 = vadd.xlane.f32.xlu0 %v3488_v3  ;;  %v650_v18 = vld [vmem:[#allocation11 + $0x28] sm:$0xff]  ;;  %v660_v19 = vld [vmem:[#allocation11 + $0x78] sm:$0xff]  ;;  %v651_v20 = vld [vmem:[#allocation11 + $0x30] sm:$0xff]  ;;  %p2855_p2 = scmp.ne.s32.totalorder %s3708_s17, %s2854_s0 }
 0x188   : > { %v664_v21 = vld [vmem:[#allocation14 + $0x8] sm:$0xff]  ;;  %v652_v22 = vld [vmem:[#allocation11 + $0x38] sm:$0xff]  ;;  %v653_v23 = vld [vmem:[#allocation11 + $0x40] sm:$0xff] }
 0x189   : > { %v655_v24 = vld [vmem:[#allocation11 + $0x50] sm:$0xff]  ;;  %v657_v25 = vld [vmem:[#allocation11 + $0x60] sm:$0xff]  ;;  %v663_v27 = vld [vmem:[#allocation14] sm:$0xff]  ;;  %p2856_p10 = pnand %p2855_p2, %p3824_p8 }
 0x18a   : > { %v659_v26 = vld [vmem:[#allocation11 + $0x70] sm:$0xff]  ;;  %v1961_v62 = vld [vmem:[#allocation8] ss:$0 sm:$0xff] }
 0x18b   : > { %716 = vadd.xlane.f32.xlu1 %v713_v4  ;;  %714 = vadd.xlane.f32.xlu0 %v712_v5  ;;  %s3715_s16 = scalar_lea.hbm %s3823_s29, %s2020_s18  ;;  %p2857_p11 = pneg %p2856_p10 }
 0x18f   : > { %1155 = vadd.xlane.f32.xlu1 %v1152_v6  ;;  %1153 = vadd.xlane.f32.xlu0 %v1151_v7 }
 0x1a0   : > { %756 = vperm.xlu1 %2370, %v646_v9  }
 0x1a4   : > { %761 = vperm.xlu1 %2370, %v647_v11  }
 0x1a5   : > { %751 = vperm.xlu0 %2369, %v645_v12  }
 0x1a8   : > { %766 = vperm.xlu1 %2370, %v648_v14  }
 0x1a9   : > { %796 = vperm.xlu0 %2369, %v654_v13  }
 0x1ac   : > { %771 = vperm.xlu1 %2370, %v649_v16   ;;  %v2372_v16 = vld [vmem:[#allocation9 + $0x8] sm:$0xff]  }
 0x1ad   : > { %806 = vperm.xlu0 %2369, %v656_v15  }
 0x1b0   : > { %776 = vperm.xlu1 %2370, %v650_v18   ;;  %v2373_v18 = vld [vmem:[#allocation9 + $0x10] sm:$0xff]  }
 0x1b1   : > { %816 = vperm.xlu0 %2369, %v658_v17  }
 0x1b4   : > { %781 = vperm.xlu1 %2370, %v651_v20   ;;  %v2376_v20 = vld [vmem:[#allocation9 + $0x28] sm:$0xff]  }
 0x1b5   : > { %826 = vperm.xlu0 %2369, %v660_v19   ;;  %v2375_v19 = vld [vmem:[#allocation9 + $0x20] sm:$0xff]  }
 0x1b8   : > { %786 = vperm.xlu1 %2370, %v652_v22   ;;  %v2378_v22 = vld [vmem:[#allocation9 + $0x38] sm:$0xff]  }
 0x1b9   : > { %1086 = vperm.xlu0 %2369, %v664_v21   ;;  %v2377_v21 = vld [vmem:[#allocation9 + $0x30] sm:$0xff]  }
 0x1bc   : > { %791 = vperm.xlu1 %2370, %v653_v23   ;;  %v2964_v23 = vmov 0.0  }
 0x1c0   : > { %801 = vperm.xlu1 %2370, %v655_v24  }
 0x1c4   : > { %811 = vperm.xlu1 %2370, %v657_v25  }
 0x1c8   : > { %821 = vperm.xlu1 %2370, %v659_v26  }
 0x1cc   : > { %1081 = vperm.xlu1 %2370, %v663_v27  }
 0x210   : > { %v1146_v28 = vpop.xlane.xlu1 %1145  ;;  %v707_v29 = vpop.xlane.xlu0 %706 }
 0x211   : > { %v710_v32 = vmul.f32 0.125, %v707_v29  ;;  %v1149_v34 = vmul.f32 0.125, %v1146_v28 }
 0x213   : > { %v720_v38 = vmul.f32 %v710_v32, %v710_v32  ;;  %v1159_v44 = vmul.f32 %v1149_v34, %v1149_v34  ;;  %v724_v58 = vsub.f32 %v3480_v1, %v710_v32  ;;  %v1163_v7 = vsub.f32 %v3477_v0, %v1149_v34  ;;  %v2374_v0 = vld [vmem:[#allocation9 + $0x18] sm:$0xff]  }
 0x214   : > { %v1148_v30 = vpop.xlane.xlu1 %1147  ;;  %v709_v31 = vpop.xlane.xlu0 %708 }
 0x215   : > { %v711_v33 = vmul.f32 0.125, %v709_v31  ;;  %v1150_v35 = vmul.f32 0.125, %v1148_v30 }
 0x217   : > { %v721_v39 = vmul.f32 %v711_v33, %v711_v33  ;;  %v1160_v45 = vmul.f32 %v1150_v35, %v1150_v35  ;;  %v725_v56 = vsub.f32 %v3488_v3, %v711_v33  ;;  %v1164_v4 = vsub.f32 %v3483_v2, %v1150_v35 }
 0x218   : > { %v717_v36 = vpop.xlane.xlu1 %716  ;;  %v715_v37 = vpop.xlane.xlu0 %714 }
 0x219   : > { %v719_v40 = vmul.f32 0.125, %v717_v36  ;;  %v718_v41 = vmul.f32 0.125, %v715_v37 }
 0x21b   : > { %v723_v42 = vsub.f32 %v719_v40, %v721_v39  ;;  %v722_v43 = vsub.f32 %v718_v41, %v720_v38 }
 0x21c   : > { %v1156_v46 = vpop.xlane.xlu1 %1155  ;;  %v1154_v47 = vpop.xlane.xlu0 %1153 }
 0x21d   : > { %v727_v48 = vadd.f32 1e-05, %v723_v42  ;;  %v726_v49 = vadd.f32 1e-05, %v722_v43  ;;  %v1158_v50 = vmul.f32 0.125, %v1156_v46  ;;  %v1157_v51 = vmul.f32 0.125, %v1154_v47 }
 0x21f   : > { %2396 = vrsqrt.f32 %v727_v48  ;;  %v1162_v52 = vsub.f32 %v1158_v50, %v1160_v45  ;;  %v1161_v53 = vsub.f32 %v1157_v51, %v1159_v44 }
 0x220   : > { %2398 = vrsqrt.f32 %v726_v49  ;;  %v757_v24 = vpop.permute.xlu1 %756 }
 0x221   : > { %v1166_v54 = vadd.f32 1e-05, %v1162_v52  ;;  %v1165_v55 = vadd.f32 1e-05, %v1161_v53 }
 0x223   : > { %2400 = vrsqrt.f32 %v1166_v54 }
 0x224   : > { %2402 = vrsqrt.f32 %v1165_v55  ;;  %v762_v25 = vpop.permute.xlu1 %761  ;;  %v752_v31 = vpop.permute.xlu0 %751 }
 0x228   : > { %v767_v26 = vpop.permute.xlu1 %766 }
 0x229   : > { %v2397_v57 = vpop.eup %2396 }
 0x22a   : > { %v2399_v60 = vpop.eup %2398  ;;  %v731_v61 = vmul.f32 %v2397_v57, %v725_v56 }
 0x22b   : > { %v730_v63 = vmul.f32 %v2399_v60, %v724_v58 }
 0x22c   : > { %v739_v5 = vmul.f32 %v1960_v59, %v731_v61  ;;  %v772_v27 = vpop.permute.xlu1 %771 }
 0x22d   : > { %v2401_v6 = vpop.eup %2400  ;;  %v738_v8 = vmul.f32 %v1960_v59, %v730_v63 }
 0x22e   : > { %v2403_v9 = vpop.eup %2402  ;;  %v747_v10 = vadd.f32 %v1961_v62, %v739_v5  ;;  %v1170_v11 = vmul.f32 %v2401_v6, %v1164_v4 }
 0x22f   : > { %v746_v12 = vadd.f32 %v1961_v62, %v738_v8  ;;  %v1169_v3 = vmul.f32 %v2403_v9, %v1163_v7 }
 0x230   : > { %v1172_v13 = vmul.f32 %v1960_v59, %v1170_v11  ;;  %v3524_v28 = vpop.permute.xlu1 %776 }
 0x231   : > { %v748_v14 = vpack.c.bf16 %v747_v10, %v746_v12  ;;  %v1171_v1 = vmul.f32 %v1960_v59, %v1169_v3 }
 0x232   : > { %v1174_v15 = vadd.f32 %v1961_v62, %v1172_v13 }
 0x233   : > { %2077 = vmatprep.subr.bf16.mxu0 %v748_v14  ;;  %v1173_v17 = vadd.f32 %v1961_v62, %v1171_v1 }
 0x234   : > { %2078 = vmatpush3.bf16.msra.mxu0 %v748_v14  ;;  %v782_v29 = vpop.permute.xlu1 %781 }
 0x235   : > { %v1175_v2 = vpack.c.bf16 %v1174_v15, %v1173_v17  ;;  %2095 = vmatprep.subr.bf16.mxu0 %v2964_v23 }
 0x237   : > { %2080 = vmatmul.mubr.msk.bf16.vlgmr.msra.gmra.mrb[0].mxu0 %vm869_vm0, %v2372_v16  ;;  %2115 = vmatprep.subr.bf16.mxu1 %v1175_v2 }
 0x238   : > { %2116 = vmatpush3.bf16.msra.mxu1 %v1175_v2  ;;  %2083 = vmatprep.mubr.msk.bf16.mxu0 %vm869_vm0, %v2373_v18  ;;  %v787_v45 = vpop.permute.xlu1 %786 }
 0x239   : > { %2133 = vmatprep.subr.bf16.mxu1 %v2964_v23 }
 0x23b   : > { %2118 = vmatmul.mubr.msk.bf16.vlgmr.msra.gmra.mrb[0].mxu1 %vm869_vm0, %v2372_v16 }
 0x23c   : > { %2121 = vmatprep.mubr.msk.bf16.mxu1 %vm869_vm0, %v2373_v18  ;;  %v3530_v7 = vpop.permute.xlu1 %791 }
 0x23f   : > { %2084 = vmatmul.mubr.msk.bf16.gmra.mrb[4].mxu0 %vm869_vm0, %v2374_v0 }
 0x240   : > { %2087 = vmatprep.mubr.msk.bf16.mxu0 %vm869_vm0, %v2375_v19 }
 0x243   : > { %2122 = vmatmul.mubr.msk.bf16.gmra.mrb[4].mxu1 %vm869_vm0, %v2374_v0 }
 0x244   : > { %2125 = vmatprep.mubr.msk.bf16.mxu1 %vm869_vm0, %v2375_v19 }
 0x247   : > { %2088 = vmatmul.mubr.msk.bf16.gmra.mrb[8].mxu0 %vm869_vm0, %v2376_v20 }
 0x248   : > { %2091 = vmatprep.mubr.msk.bf16.mxu0 %vm869_vm0, %v2377_v21 }
 0x24b   : > { %2126 = vmatmul.mubr.msk.bf16.gmra.mrb[8].mxu1 %vm869_vm0, %v2376_v20 }
 0x24c   : > { %2129 = vmatprep.mubr.msk.bf16.mxu1 %vm869_vm0, %v2377_v21 }
 0x24f   : > { %2092 = vmatmul.mubr.msk.bf16.gmra.mrb[12].mxu0 %vm869_vm0, %v2378_v22 }
 0x250   : > { %2111 = vmatprep.mubr.msk.bf16.mxu0 %vm2965_vm1, %v2964_v23 }
 0x253   : > { %2130 = vmatmul.mubr.msk.bf16.gmra.mrb[12].mxu1 %vm869_vm0, %v2378_v22 }
 0x254   : > { %2149 = vmatprep.mubr.msk.bf16.mxu1 %vm2965_vm1, %v2964_v23 }
 0x30a   : > { %v2081_v30 = vpop.f32.mrb[0].mxu0 }
 0x30b   : > { %v937_v32 = vadd.f32 %v2081_v30, %v762_v25  ;;  %v928_v33 = vpop.f32.mrb[1].mxu0  ;;  %v3542_v30 = vpop.permute.xlu0 %796 }
 0x30c   : > { %v929_v34 = vadd.f32 %v928_v33, %v752_v31  ;;  %v2082_v35 = vpop.f32.mrb[2].mxu0 }
 0x30d   : > { %v1009_v36 = vmul.f32 0.70710677, %v937_v32  ;;  %v940_v37 = vadd.f32 %v2082_v35, %v767_v26  ;;  %v931_v38 = vpop.f32.mrb[3].mxu0  ;;  %v3526_v55 = vmul.f32 0.5, %v937_v32  ;;  %v802_v35 = vpop.permute.xlu1 %801 }
 0x30e   : > { %v1007_v39 = vmul.f32 0.70710677, %v929_v34  ;;  %v932_v40 = vadd.f32 %v931_v38, %v757_v24  ;;  %v2119_v41 = vpop.f32.mrb[0].mxu1  ;;  %v3528_v59 = vmul.f32 0.5, %v929_v34 }
 0x30f   : > { %2404 = verf.f32 %v1009_v36  ;;  %v1010_v42 = vmul.f32 0.70710677, %v940_v37  ;;  %v1219_v43 = vadd.f32 %v2119_v41, %v762_v25  ;;  %v1210_v44 = vpop.f32.mrb[1].mxu1  ;;  %v994_v63 = vmul.f32 0.5, %v940_v37 }
 0x310   : > { %2406 = verf.f32 %v1007_v39  ;;  %v1008_v46 = vmul.f32 0.70710677, %v932_v40  ;;  %v1211_v47 = vadd.f32 %v1210_v44, %v752_v31  ;;  %v2120_v48 = vpop.f32.mrb[2].mxu1  ;;  %v992_v8 = vmul.f32 0.5, %v932_v40 }
 0x311   : > { %2408 = verf.f32 %v1010_v42  ;;  %v1291_v49 = vmul.f32 0.70710677, %v1219_v43  ;;  %v1222_v50 = vadd.f32 %v2120_v48, %v767_v26  ;;  %v1213_v51 = vpop.f32.mrb[3].mxu1  ;;  %v3533_v12 = vmul.f32 0.5, %v1219_v43 }
 0x312   : > { %2410 = verf.f32 %v1008_v46  ;;  %v1289_v52 = vmul.f32 0.70710677, %v1211_v47  ;;  %v1214_v53 = vadd.f32 %v1213_v51, %v757_v24  ;;  %v2085_v54 = vpop.f32.mrb[4].mxu0  ;;  %v3535_v1 = vmul.f32 0.5, %v1211_v47 }
 0x313   : > { %2412 = verf.f32 %v1291_v49  ;;  %v1292_v56 = vmul.f32 0.70710677, %v1222_v50  ;;  %v953_v57 = vadd.f32 %v2085_v54, %v782_v29  ;;  %v944_v58 = vpop.f32.mrb[5].mxu0  ;;  %v1276_v2 = vmul.f32 0.5, %v1222_v50 }
 0x314   : > { %2414 = verf.f32 %v1289_v52  ;;  %v1290_v60 = vmul.f32 0.70710677, %v1214_v53  ;;  %v945_v61 = vadd.f32 %v944_v58, %v772_v27  ;;  %v2086_v62 = vpop.f32.mrb[6].mxu0  ;;  %v1274_v24 = vmul.f32 0.5, %v1214_v53 }
 0x315   : > { %2416 = verf.f32 %v1292_v56  ;;  %v1013_v4 = vmul.f32 0.70710677, %v953_v57  ;;  %v956_v5 = vadd.f32 %v2086_v62, %v787_v45  ;;  %v947_v6 = vpop.f32.mrb[7].mxu0  ;;  %v3544_v31 = vmul.f32 0.5, %v953_v57 }
 0x316   : > { %2418 = verf.f32 %v1290_v60  ;;  %v1011_v9 = vmul.f32 0.70710677, %v945_v61  ;;  %v948_v10 = vadd.f32 %v947_v6, %v3524_v28  ;;  %v2123_v11 = vpop.f32.mrb[4].mxu1  ;;  %v3547_v37 = vmul.f32 0.5, %v945_v61 }
 0x317   : > { %2420 = verf.f32 %v1013_v4  ;;  %v1014_v3 = vmul.f32 0.70710677, %v956_v5  ;;  %v1235_v13 = vadd.f32 %v2123_v11, %v782_v29  ;;  %v1226_v14 = vpop.f32.mrb[5].mxu1  ;;  %v998_v42 = vmul.f32 0.5, %v956_v5 }
 0x318   : > { %2422 = verf.f32 %v1011_v9  ;;  %v1012_v15 = vmul.f32 0.70710677, %v948_v10  ;;  %v3537_v16 = vadd.f32 %v1226_v14, %v772_v27  ;;  %v2124_v17 = vpop.f32.mrb[6].mxu1  ;;  %v996_v54 = vmul.f32 0.5, %v948_v10 }
 0x319   : > { %v2405_v18 = vpop.eup %2404  ;;  %2424 = verf.f32 %v1014_v3  ;;  %v1295_v0 = vmul.f32 0.70710677, %v1235_v13  ;;  %v3539_v19 = vadd.f32 %v2124_v17, %v787_v45  ;;  %v1229_v20 = vpop.f32.mrb[7].mxu1  ;;  %v1279_v6 = vmul.f32 0.5, %v1235_v13 }
 0x31a   : > { %v2407_v21 = vpop.eup %2406  ;;  %v1041_v22 = vadd.f32 1.0, %v2405_v18  ;;  %2426 = verf.f32 %v1012_v15  ;;  %v1293_v25 = vmul.f32 0.70710677, %v3537_v16  ;;  %v2089_v26 = vpop.f32.mrb[8].mxu0  ;;  %v3550_v38 = vadd.f32 %v1229_v20, %v3524_v28 }
 0x31b   : > { %v2409_v29 = vpop.eup %2408  ;;  %v1039_v27 = vadd.f32 1.0, %v2407_v21  ;;  %2428 = verf.f32 %v1295_v0  ;;  %v1296_v32 = vmul.f32 0.70710677, %v3539_v19  ;;  %v960_v33 = vpop.f32.mrb[9].mxu0  ;;  %v3552_v43 = vadd.f32 %v2089_v26, %v802_v35 }
 0x31c   : > { %v2411_v34 = vpop.eup %2410  ;;  %v1042_v36 = vadd.f32 1.0, %v2409_v29  ;;  %2430 = verf.f32 %v1293_v25  ;;  %v2090_v39 = vpop.f32.mrb[10].mxu0  ;;  %v1057_v46 = vmul.f32 %v1041_v22, %v3526_v55  ;;  %v1294_v49 = vmul.f32 0.70710677, %v3550_v38 }
 0x31d   : > { %v2413_v40 = vpop.eup %2412  ;;  %v1040_v41 = vadd.f32 1.0, %v2411_v34  ;;  %2432 = verf.f32 %v1296_v32  ;;  %v963_v44 = vpop.f32.mrb[11].mxu0  ;;  %v1055_v28 = vmul.f32 %v1039_v27, %v3528_v59  ;;  %v1017_v61 = vmul.f32 0.70710677, %v3552_v43 }
 0x31e   : > { %v2415_v45 = vpop.eup %2414  ;;  %v1058_v47 = vmul.f32 %v1042_v36, %v994_v63  ;;  %v1323_v48 = vadd.f32 1.0, %v2413_v40  ;;  %v2127_v50 = vpop.f32.mrb[8].mxu1  ;;  %2434 = verf.f32 %v1294_v49  ;;  %v3572_v3 = vadd.f32 %v960_v33, %v3530_v7 }
 0x31f   : > { %v2417_v51 = vpop.eup %2416  ;;  %v1056_v52 = vmul.f32 %v1040_v41, %v992_v8  ;;  %v1321_v53 = vadd.f32 1.0, %v2415_v45  ;;  %v3557_v56 = vpop.f32.mrb[9].mxu1  ;;  %v1277_v13 = vmul.f32 0.5, %v3537_v16  ;;  %2436 = verf.f32 %v1017_v61 }
 0x320   : > { %v2419_v57 = vpop.eup %2418  ;;  %v1072_v58 = vpack.c.bf16 %v1058_v47, %v1057_v46  ;;  %v1324_v60 = vadd.f32 1.0, %v2417_v51  ;;  %v3560_v55 = vpop.f32.mrb[10].mxu1  ;;  %v3565_v5 = vmul.f32 %v1323_v48, %v3533_v12  ;;  %v3586_v26 = vadd.f32 %v963_v44, %v3542_v30 }
 0x321   : > { %v2421_v62 = vpop.eup %2420  ;;  %v3562_v63 = vpop.permute.xlu0 %806  ;;  %v1071_v4 = vpack.c.bf16 %v1056_v52, %v1055_v28  ;;  %v1322_v59 = vadd.f32 1.0, %v2419_v57  ;;  %v1337_v18 = vmul.f32 %v1321_v53, %v3535_v1  ;;  %v1015_v27 = vmul.f32 0.70710677, %v3572_v3 }
 0x322   : > { %v3567_v8 = vpop.f32.mrb[11].mxu1  ;;  %v2423_v9 = vpop.eup %2422  ;;  %v3569_v10 = vmul.f32 %v1324_v60, %v1276_v2  ;;  %v1045_v11 = vadd.f32 1.0, %v2421_v62  ;;  %v3575_v14 = vadd.f32 %v2090_v39, %v3562_v63  ;;  %v3592_v32 = vadd.f32 %v2127_v50, %v802_v35 }
 0x323   : > { %v2093_v15 = vpop.f32.mrb[12].mxu0  ;;  %v2425_v17 = vpop.eup %2424  ;;  %v1338_v12 = vmul.f32 %v1322_v59, %v1274_v24  ;;  %v1043_v0 = vadd.f32 1.0, %v2423_v9  ;;  %2096 = vmatpush3.bf16.msra.mxu0 %v1071_v4  ;;  %v1280_v48 = vmul.f32 0.5, %v3539_v19  ;;  %2438 = verf.f32 %v1015_v27 }
 0x324   : > { %v3579_v20 = vpop.f32.mrb[13].mxu0  ;;  %v2427_v2 = vpop.eup %2426  ;;  %v1354_v22 = vpack.c.bf16 %v3569_v10, %v3565_v5  ;;  %v1046_v25 = vadd.f32 1.0, %v2425_v17  ;;  %2097 = vmatprep.subr.bf16.mxu0 %v2964_v23  ;;  %v1061_v36 = vmul.f32 %v1045_v11, %v3544_v31  ;;  %v1018_v41 = vmul.f32 0.70710677, %v3575_v14 }
 0x325   : > { %v3581_v21 = vpop.permute.xlu1 %811  ;;  %v3588_v29 = vpop.f32.mrb[14].mxu0  ;;  %v1353_v16 = vpack.c.bf16 %v1338_v12, %v1337_v18  ;;  %v1044_v24 = vadd.f32 1.0, %v2427_v2  ;;  %v1059_v46 = vmul.f32 %v1043_v0, %v3547_v37  ;;  %v1278_v51 = vmul.f32 0.5, %v3550_v38 }
 0x326   : > { %v2429_v1 = vpop.eup %2428  ;;  %v979_v33 = vpop.f32.mrb[15].mxu0  ;;  %v1062_v39 = vmul.f32 %v1046_v25, %v998_v42  ;;  %2440 = verf.f32 %v1018_v41  ;;  %v1016_v52 = vmul.f32 0.70710677, %v3586_v26  ;;  %v1299_v38 = vmul.f32 0.70710677, %v3592_v32 }
 0x327   : > { %v2431_v34 = vpop.eup %2430  ;;  %v1327_v40 = vadd.f32 1.0, %v2429_v1  ;;  %v2131_v44 = vpop.f32.mrb[12].mxu1  ;;  %v1060_v47 = vmul.f32 %v1044_v24, %v996_v54  ;;  %2098 = vmatpush3.bf16.msra.mxu0 %v1072_v58  ;;  %2134 = vmatpush3.bf16.msra.mxu1 %v1353_v16  ;;  %v3611_v60 = vadd.f32 %v3557_v56, %v3530_v7  ;;  %v3615_v61 = vadd.f32 %v3560_v55, %v3562_v63 }
 0x328   : > { %v2433_v45 = vpop.eup %2432  ;;  %v1258_v49 = vpop.f32.mrb[13].mxu1  ;;  %v1074_v35 = vpack.c.bf16 %v1062_v39, %v1061_v36  ;;  %2099 = vmatprep.subr.bf16.mxu0 %v2964_v23  ;;  %2135 = vmatprep.subr.bf16.mxu1 %v2964_v23  ;;  %v1325_v19 = vadd.f32 1.0, %v2431_v34  ;;  %2442 = verf.f32 %v1016_v52  ;;  %v3619_v4 = vadd.f32 %v3567_v8, %v3542_v30 }
 0x329   : > { %v1328_v50 = vadd.f32 1.0, %v2433_v45  ;;  %v3599_v31 = vpop.f32.mrb[14].mxu1  ;;  %v3603_v42 = vpop.permute.xlu0 %816  ;;  %v1073_v37 = vpack.c.bf16 %v1060_v47, %v1059_v46  ;;  %v1343_v28 = vmul.f32 %v1327_v40, %v1279_v6  ;;  %2444 = verf.f32 %v1299_v38 }
 0x32a   : > { %v3606_v53 = vpop.f32.mrb[15].mxu1  ;;  %v2435_v54 = vpop.eup %2434  ;;  %v1341_v7 = vmul.f32 %v1325_v19, %v1277_v13  ;;  %v1297_v55 = vmul.f32 0.70710677, %v3611_v60  ;;  %v1300_v63 = vmul.f32 0.70710677, %v3615_v61  ;;  %v3631_v11 = vadd.f32 %v3579_v20, %v3581_v21 }
 0x32b   : > { %v822_v57 = vpop.permute.xlu1 %821  ;;  %v1344_v58 = vmul.f32 %v1328_v50, %v1280_v48  ;;  %v1326_v62 = vadd.f32 1.0, %v2435_v54  ;;  %2100 = vmatpush3.bf16.msra.mxu0 %v1073_v37  ;;  %2136 = vmatpush3.bf16.msra.mxu1 %v1354_v22  ;;  %v2437_v6 = vpop.eup %2436  ;;  %v1298_v30 = vmul.f32 0.70710677, %v3619_v4  ;;  %v3637_v17 = vadd.f32 %v979_v33, %v3603_v42 }
 0x32c   : > { %v3621_v5 = vadd.f32 %v2093_v15, %v822_v57  ;;  %2101 = vmatprep.subr.bf16.mxu0 %v2964_v23  ;;  %2137 = vmatprep.subr.bf16.mxu1 %v2964_v23  ;;  %2446 = verf.f32 %v1297_v55  ;;  %v3639_v18 = vadd.f32 %v2131_v44, %v822_v57  ;;  %v1049_v0 = vadd.f32 1.0, %v2437_v6 }
 0x32d   : > { %v1356_v59 = vpack.c.bf16 %v1344_v58, %v1343_v28  ;;  %v1342_v56 = vmul.f32 %v1326_v62, %v1278_v51  ;;  %v827_v8 = vpop.permute.xlu0 %826  ;;  %2448 = verf.f32 %v1300_v63  ;;  %v2439_v12 = vpop.eup %2438  ;;  %v1019_v13 = vmul.f32 0.70710677, %v3631_v11 }
 0x32e   : > { %v1021_v10 = vmul.f32 0.70710677, %v3621_v5  ;;  %v3634_v15 = vadd.f32 %v3588_v29, %v827_v8  ;;  %2450 = verf.f32 %v1298_v30  ;;  %v3644_v20 = vadd.f32 %v1258_v49, %v3581_v21 }
 0x32f   : > { %v1355_v9 = vpack.c.bf16 %v1342_v56, %v1341_v7  ;;  %2102 = vmatpush3.bf16.msra.mxu0 %v1074_v35  ;;  %v1001_v22 = vmul.f32 0.5, %v3552_v43  ;;  %v999_v25 = vmul.f32 0.5, %v3572_v3  ;;  %v1002_v1 = vmul.f32 0.5, %v3575_v14 }
 0x330   : > { %2103 = vmatprep.subr.bf16.mxu0 %v2964_v23  ;;  %v2441_v2 = vpop.eup %2440  ;;  %2452 = verf.f32 %v1021_v10  ;;  %v1022_v29 = vmul.f32 0.70710677, %v3634_v15  ;;  %v1020_v24 = vmul.f32 0.70710677, %v3637_v17  ;;  %v1047_v27 = vadd.f32 1.0, %v2439_v12 }
 0x331   : > { %2138 = vmatpush3.bf16.msra.mxu1 %v1355_v9  ;;  %v1050_v16 = vadd.f32 1.0, %v2441_v2  ;;  %2454 = verf.f32 %v1019_v13  ;;  %v1000_v21 = vmul.f32 0.5, %v3586_v26  ;;  %v1303_v33 = vmul.f32 0.70710677, %v3639_v18 }
 0x332   : > { %2139 = vmatprep.subr.bf16.mxu1 %v2964_v23  ;;  %2456 = verf.f32 %v1022_v29  ;;  %v2443_v43 = vpop.eup %2442  ;;  %v1065_v34 = vmul.f32 %v1049_v0, %v1001_v22  ;;  %v1301_v36 = vmul.f32 0.70710677, %v3644_v20  ;;  %v1270_v14 = vadd.f32 %v3599_v31, %v827_v8 }
 0x333   : > { %v1066_v3 = vmul.f32 %v1050_v16, %v1002_v1  ;;  %2458 = verf.f32 %v1020_v24  ;;  %v2445_v39 = vpop.eup %2444  ;;  %v1048_v40 = vadd.f32 1.0, %v2443_v43  ;;  %v1262_v41 = vadd.f32 %v3606_v53, %v3603_v42 }
 0x334   : > { %2460 = verf.f32 %v1303_v33  ;;  %v1063_v44 = vmul.f32 %v1047_v27, %v999_v25  ;;  %v1304_v46 = vmul.f32 0.70710677, %v1270_v14  ;;  %v1331_v48 = vadd.f32 1.0, %v2445_v39 }
 0x335   : > { %2140 = vmatpush3.bf16.msra.mxu1 %v1356_v59  ;;  %v1076_v26 = vpack.c.bf16 %v1066_v3, %v1065_v34  ;;  %2462 = verf.f32 %v1301_v36  ;;  %v1064_v45 = vmul.f32 %v1048_v40, %v1000_v21  ;;  %v1302_v49 = vmul.f32 0.70710677, %v1262_v41  ;;  %v2379_v40 = vld [vmem:[#allocation12] sm:$0xff]  }
 0x336   : > { %2141 = vmatprep.subr.bf16.mxu1 %v2964_v23  ;;  %v2447_v47 = vpop.eup %2446  ;;  %2464 = verf.f32 %v1304_v46  ;;  %v1283_v31 = vmul.f32 0.5, %v3592_v32  ;;  %v1284_v28 = vmul.f32 0.5, %v3615_v61  ;;  %v1281_v52 = vmul.f32 0.5, %v3611_v60 }
 0x337   : > { %v2449_v35 = vpop.eup %2448  ;;  %v1075_v50 = vpack.c.bf16 %v1064_v45, %v1063_v44  ;;  %v1329_v51 = vadd.f32 1.0, %v2447_v47  ;;  %2466 = verf.f32 %v1302_v49  ;;  %v1282_v53 = vmul.f32 0.5, %v3619_v4 }
 0x338   : > { %v2451_v37 = vpop.eup %2450  ;;  %v1332_v42 = vadd.f32 1.0, %v2449_v35  ;;  %v1347_v58 = vmul.f32 %v1331_v48, %v1283_v31  ;;  %v1005_v63 = vmul.f32 0.5, %v3621_v5  ;;  %v1006_v60 = vmul.f32 0.5, %v3634_v15  ;;  %v1087_v35 = vpop.permute.xlu0 %1086 }
 0x339   : > { %v1330_v54 = vadd.f32 1.0, %v2451_v37  ;;  %2104 = vmatpush3.bf16.msra.mxu0 %v1075_v50  ;;  %v1345_v7 = vmul.f32 %v1329_v51, %v1281_v52  ;;  %v1003_v8 = vmul.f32 0.5, %v3631_v11  ;;  %v1004_v9 = vmul.f32 0.5, %v3637_v17  ;;  %v2484_v50 = vld [vmem:[%s3446_s20] sm:$0xff] }
 0x33a   : > { %v2453_v19 = vpop.eup %2452  ;;  %v1348_v38 = vmul.f32 %v1332_v42, %v1284_v28  ;;  %2105 = vmatprep.subr.bf16.mxu0 %v2964_v23  ;;  %v1287_v17 = vmul.f32 0.5, %v3639_v18  ;;  %v1288_v16 = vmul.f32 0.5, %v1270_v14  ;;  %v1285_v27 = vmul.f32 0.5, %v3644_v20  ;;  %v1082_v14 = vpop.permute.xlu1 %1081 }
 0x33b   : > { %v2455_v57 = vpop.eup %2454  ;;  %v1053_v62 = vadd.f32 1.0, %v2453_v19  ;;  %v1346_v32 = vmul.f32 %v1330_v54, %v1282_v53  ;;  %v1286_v21 = vmul.f32 0.5, %v1262_v41  ;;  %v699_v18 = vlaneseq }
 0x33c   : > { %v2457_v59 = vpop.eup %2456  ;;  %v1051_v56 = vadd.f32 1.0, %v2455_v57  ;;  %v1358_v55 = vpack.c.bf16 %v1348_v38, %v1347_v58  ;;  %v2485_v57 = vld [vmem:[%s3446_s20 + $0x10] sm:$0xff] }
 0x33d   : > { %v2459_v61 = vpop.eup %2458  ;;  %v1054_v6 = vadd.f32 1.0, %v2457_v59  ;;  %v1357_v30 = vpack.c.bf16 %v1346_v32, %v1345_v7  ;;  %2106 = vmatpush3.bf16.msra.mxu0 %v1076_v26  ;;  %v1069_v0 = vmul.f32 %v1053_v62, %v1005_v63  ;;  %v700_v20 = vand.u32 127, %v699_v18  ;;  %v2486_v62 = vld [vmem:[%s3446_s20 + $0x8] sm:$0xff]  ;;  %v2487_v7 = vld [vmem:[%s3446_s20 + $0x18] sm:$0xff]  ;;  %s2966_s20 = smov [#allocation24]  }
 0x33e   : > { %v2461_v4 = vpop.eup %2460  ;;  %v1052_v10 = vadd.f32 1.0, %v2459_v61  ;;  %2107 = vmatprep.subr.bf16.mxu0 %v2964_v23  ;;  %v1067_v2 = vmul.f32 %v1051_v56, %v1003_v8  ;;  %v2384_v8 = vld [vmem:[#allocation18 + $0x20] sm:$0xff]   ;;  %s2858_s24 = sshll.u32 %s2966_s20, 4  ;;  %s2859_s24 = int_to_ptr.vmem [resolvable:$false] %s2858_s24 }
 0x33f   : > { %v2463_v12 = vpop.eup %2462  ;;  %v1070_v13 = vmul.f32 %v1054_v6, %v1006_v60  ;;  %2142 = vmatpush3.bf16.msra.mxu1 %v1357_v30  ;;  %v1335_v25 = vadd.f32 1.0, %v2461_v4  ;;  %vm701_vm2 = vcmp.lt.s32.totalorder %v700_v20, 8  ;;  %v2380_v60 = vld [vmem:[#allocation18] sm:$0xff]   ;;  %v2381_v6 = vld [vmem:[#allocation18 + $0x8] sm:$0xff]   ;;  %v2382_v4 = vld [vmem:[#allocation18 + $0x10] sm:$0xff]   ;;  %s2860_s2 = scalar_lea.vmem %s2859_s24, 1024  ;;  %p2861_p12 = scmp.lt.s32.totalorder %s3708_s17, %s2859_s24 }
 0x340   : > { %v1068_v22 = vmul.f32 %v1052_v10, %v1004_v9  ;;  %2143 = vmatprep.subr.bf16.mxu1 %v2964_v23  ;;  %v2465_v15 = vpop.eup %2464  ;;  %v1333_v1 = vadd.f32 1.0, %v2463_v12  ;;  %v1959_v41 = vsel %vm701_vm2, 1.0, %v2964_v23  ;;  %v2383_v30 = vld [vmem:[#allocation18 + $0x18] sm:$0xff]   ;;  %v2385_v9 = vld [vmem:[#allocation18 + $0x28] sm:$0xff]   ;;  %v2386_v10 = vld [vmem:[#allocation18 + $0x30] sm:$0xff]   ;;  %p2862_p0 = scmp.lt.s32.totalorder %s2860_s2, %s2854_s0 }
 0x341   : > { %v1078_v5 = vpack.c.bf16 %v1070_v13, %v1069_v0  ;;  %v2467_v11 = vpop.eup %2466  ;;  %v1336_v24 = vadd.f32 1.0, %v2465_v15  ;;  %v1351_v43 = vmul.f32 %v1335_v25, %v1287_v17  ;;  %v2387_v12 = vld [vmem:[#allocation18 + $0x38] sm:$0xff]   ;;  %v2388_v0 = vld [vmem:[#allocation21] sm:$0xff]   ;;  %v2389_v13 = vld [vmem:[#allocation21 + $0x8] sm:$0xff]  }
 0x342   : > { %v1077_v29 = vpack.c.bf16 %v1068_v22, %v1067_v2  ;;  %v1334_v33 = vadd.f32 1.0, %v2467_v11  ;;  %v1349_v3 = vmul.f32 %v1333_v1, %v1285_v27  ;;  %p2863_p5 = por %p2862_p0, %p2861_p12 }
 0x343   : > { %2144 = vmatpush3.bf16.msra.mxu1 %v1358_v55  ;;  %v1352_v34 = vmul.f32 %v1336_v24, %v1288_v16 }
 0x344   : > { %2108 = vmatpush3.bf16.msra.mxu0 %v1077_v29  ;;  %2145 = vmatprep.subr.bf16.mxu1 %v2964_v23  ;;  %v1350_v36 = vmul.f32 %v1334_v33, %v1286_v21  ;;  %p2864_p7 = pnand %p2863_p5, %p2857_p11 }
 0x345   : > { %2109 = vmatprep.subr.bf16.mxu0 %v2964_v23  ;;  %v1360_v39 = vpack.c.bf16 %v1352_v34, %v1351_v43 }
 0x346   : > { %v1359_v26 = vpack.c.bf16 %v1350_v36, %v1349_v3 }
 0x348   : > { %2110 = vmatpush3.bf16.msra.mxu0 %v1078_v5  ;;  %2146 = vmatpush3.bf16.msra.mxu1 %v1359_v26 }
 0x349   : > { %2147 = vmatprep.subr.bf16.mxu1 %v2964_v23  ;;  %2153 = vmatprep.subr.bf16.mxu0 %v2380_v60 }
 0x34b   : > { %2112 = vmatmul.mubr.bf16.vlgmr.msra.gmra.mrb[16].mxu0 %v2379_v40 }
 0x34c   : > { %2148 = vmatpush3.bf16.msra.mxu1 %v1360_v39  ;;  %2154 = vmatpush3.bf16.msra.mxu0 %v2380_v60 }
 0x34d   : > { %2155 = vmatprep.subr.bf16.mxu0 %v2381_v6  ;;  %2173 = vmatprep.subr.bf16.mxu1 %v2388_v0 }
 0x34f   : > { %2150 = vmatmul.mubr.bf16.vlgmr.msra.gmra.mrb[16].mxu1 %v2379_v40 }
 0x350   : > { %2156 = vmatpush3.bf16.msra.mxu0 %v2381_v6  ;;  %2174 = vmatpush3.bf16.msra.mxu1 %v2388_v0  ;;  %v1991_v0 = vld [vmem:[#allocation20] ss:$0 sm:$0xff] }
 0x351   : > { %2157 = vmatprep.subr.bf16.mxu0 %v2382_v4  ;;  %2175 = vmatprep.subr.bf16.mxu1 %v2389_v13 }
 0x354   : > { %2158 = vmatpush3.bf16.msra.mxu0 %v2382_v4  ;;  %2176 = vmatpush3.bf16.msra.mxu1 %v2389_v13  ;;  %v2390_v4 = vld [vmem:[#allocation21 + $0x10] sm:$0xff]  }
 0x355   : > { %2159 = vmatprep.subr.bf16.mxu0 %v2383_v30  ;;  %2177 = vmatprep.subr.bf16.mxu1 %v2390_v4 }
 0x358   : > { %2160 = vmatpush3.bf16.msra.mxu0 %v2383_v30  ;;  %2178 = vmatpush3.bf16.msra.mxu1 %v2390_v4  ;;  %v2391_v30 = vld [vmem:[#allocation21 + $0x18] sm:$0xff]  }
 0x359   : > { %2161 = vmatprep.subr.bf16.mxu0 %v2384_v8  ;;  %2179 = vmatprep.subr.bf16.mxu1 %v2391_v30 }
 0x35c   : > { %2162 = vmatpush3.bf16.msra.mxu0 %v2384_v8  ;;  %2180 = vmatpush3.bf16.msra.mxu1 %v2391_v30  ;;  %v2392_v8 = vld [vmem:[#allocation21 + $0x20] sm:$0xff]  }
 0x35d   : > { %2163 = vmatprep.subr.bf16.mxu0 %v2385_v9  ;;  %2181 = vmatprep.subr.bf16.mxu1 %v2392_v8 }
 0x360   : > { %2164 = vmatpush3.bf16.msra.mxu0 %v2385_v9  ;;  %2182 = vmatpush3.bf16.msra.mxu1 %v2392_v8  ;;  %v2393_v9 = vld [vmem:[#allocation21 + $0x28] sm:$0xff]  }
 0x361   : > { %2165 = vmatprep.subr.bf16.mxu0 %v2386_v10  ;;  %2183 = vmatprep.subr.bf16.mxu1 %v2393_v9 }
 0x364   : > { %2166 = vmatpush3.bf16.msra.mxu0 %v2386_v10  ;;  %2184 = vmatpush3.bf16.msra.mxu1 %v2393_v9  ;;  %v2394_v10 = vld [vmem:[#allocation21 + $0x30] sm:$0xff]  }
 0x365   : > { %2167 = vmatprep.subr.bf16.mxu0 %v2387_v12  ;;  %2185 = vmatprep.subr.bf16.mxu1 %v2394_v10 }
 0x368   : > { %2168 = vmatpush3.bf16.msra.mxu0 %v2387_v12  ;;  %2186 = vmatpush3.bf16.msra.mxu1 %v2394_v10  ;;  %v2395_v12 = vld [vmem:[#allocation21 + $0x38] sm:$0xff]  }
 0x369   : > { %2187 = vmatprep.subr.bf16.mxu1 %v2395_v12 }
 0x36c   : > { %2188 = vmatpush3.bf16.msra.mxu1 %v2395_v12 }
 0x41e   : > { %v1129_v44 = vpop.f32.mrb[16].mxu0 }
 0x41f   : > { %v1130_v45 = vadd.f32 %v1129_v44, %v1082_v14  ;;  %v2113_v46 = vpop.f32.mrb[17].mxu0 }
 0x420   : > { %v1132_v47 = vpop.f32.mrb[18].mxu0 }
 0x421   : > { %v1136_v48 = vmul.f32 %v1959_v41, %v1130_v45  ;;  %v2114_v49 = vpop.f32.mrb[19].mxu0  ;;  %v1133_v37 = vadd.f32 %v1132_v47, %v1087_v35 }
 0x422   : > { %v1395_v31 = vpop.f32.mrb[16].mxu1  ;;  %v1989_v49 = vld [vmem:[#allocation15] ss:$0 sm:$0xff] }
 0x423   : > { %v3677_v51 = vadd.f32 %v2484_v50, %v1136_v48  ;;  %v1396_v28 = vadd.f32 %v1395_v31, %v1082_v14  ;;  %v2151_v42 = vpop.f32.mrb[17].mxu1  ;;  %v1137_v19 = vmul.f32 %v1959_v41, %v1133_v37 }
 0x424   : > { %v1398_v23 = vpop.f32.mrb[18].mxu1 }
 0x425   : > { %1412 = vadd.xlane.f32.xlu1 %v3677_v51  ;;  %v1402_v52 = vmul.f32 %v1959_v41, %v1396_v28  ;;  %v1399_v53 = vadd.f32 %v1398_v23, %v1087_v35  ;;  %v2152_v54 = vpop.f32.mrb[19].mxu1  ;;  %v3684_v59 = vadd.f32 %v2486_v62, %v1137_v19  ;;  %v1424_v61 = vmul.f32 %v3677_v51, %v3677_v51  ;;  %v1990_v19 = vld [vmem:[#allocation17] ss:$0 sm:$0xff] }
 0x427   : > { %v3681_v58 = vadd.f32 %v2485_v57, %v1402_v52  ;;  %v1403_v38 = vmul.f32 %v1959_v41, %v1399_v53  ;;  %v1425_v56 = vmul.f32 %v3684_v59, %v3684_v59 }
 0x429   : > { %v3687_v32 = vadd.f32 %v2487_v7, %v1403_v38  ;;  %1416 = vadd.xlane.f32.xlu0 %v3681_v58  ;;  %v1426_v63 = vmul.f32 %v3681_v58, %v3681_v58 }
 0x42b   : > { %1418 = vadd.xlane.f32.xlu1 %v3687_v32  ;;  %v1427_v55 = vmul.f32 %v3687_v32, %v3687_v32 }
 0x42d   : > { %1414 = vadd.xlane.f32.xlu0 %v3684_v59 }
 0x42f   : > { %1430 = vadd.xlane.f32.xlu1 %v1425_v56 }
 0x431   : > { %1428 = vadd.xlane.f32.xlu0 %v1424_v61 }
 0x433   : > { %1434 = vadd.xlane.f32.xlu1 %v1427_v55 }
 0x435   : > { %1432 = vadd.xlane.f32.xlu0 %v1426_v63 }
 0x4b2   : > { %v1413_v2 = vpop.xlane.xlu1 %1412 }
 0x4b3   : > { %v1420_v15 = vmul.f32 0.125, %v1413_v2 }
 0x4b5   : > { %v1440_v21 = vmul.f32 %v1420_v15, %v1420_v15  ;;  %v1448_v35 = vsub.f32 %v3677_v51, %v1420_v15 }
 0x4b6   : > { %v1417_v22 = vpop.xlane.xlu0 %1416 }
 0x4b7   : > { %v1422_v24 = vmul.f32 0.125, %v1417_v22 }
 0x4b8   : > { %v1419_v5 = vpop.xlane.xlu1 %1418 }
 0x4b9   : > { %v1423_v11 = vmul.f32 0.125, %v1419_v5  ;;  %v1442_v26 = vmul.f32 %v1422_v24, %v1422_v24  ;;  %v1450_v52 = vsub.f32 %v3681_v58, %v1422_v24 }
 0x4ba   : > { %v1415_v25 = vpop.xlane.xlu0 %1414 }
 0x4bb   : > { %v1421_v29 = vmul.f32 0.125, %v1415_v25  ;;  %v1443_v3 = vmul.f32 %v1423_v11, %v1423_v11  ;;  %v1451_v31 = vsub.f32 %v3687_v32, %v1423_v11 }
 0x4bc   : > { %v1431_v1 = vpop.xlane.xlu1 %1430 }
 0x4bd   : > { %v1441_v17 = vmul.f32 %v1421_v29, %v1421_v29  ;;  %v1437_v16 = vmul.f32 0.125, %v1431_v1  ;;  %v1449_v47 = vsub.f32 %v3684_v59, %v1421_v29 }
 0x4be   : > { %v1429_v27 = vpop.xlane.xlu0 %1428 }
 0x4bf   : > { %v1445_v33 = vsub.f32 %v1437_v16, %v1441_v17  ;;  %v1436_v43 = vmul.f32 0.125, %v1429_v27 }
 0x4c0   : > { %v1435_v34 = vpop.xlane.xlu1 %1434 }
 0x4c1   : > { %v1453_v36 = vadd.f32 1e-05, %v1445_v33  ;;  %v1444_v39 = vsub.f32 %v1436_v43, %v1440_v21  ;;  %v1439_v40 = vmul.f32 0.125, %v1435_v34 }
 0x4c2   : > { %v1433_v18 = vpop.xlane.xlu0 %1432 }
 0x4c3   : > { %2468 = vrsqrt.f32 %v1453_v36  ;;  %v1452_v20 = vadd.f32 1e-05, %v1444_v39  ;;  %v1447_v14 = vsub.f32 %v1439_v40, %v1443_v3  ;;  %v1438_v41 = vmul.f32 0.125, %v1433_v18 }
 0x4c5   : > { %2470 = vrsqrt.f32 %v1452_v20  ;;  %v1455_v44 = vadd.f32 1e-05, %v1447_v14  ;;  %v1446_v45 = vsub.f32 %v1438_v41, %v1442_v26 }
 0x4c7   : > { %2472 = vrsqrt.f32 %v1455_v44  ;;  %v1454_v46 = vadd.f32 1e-05, %v1446_v45 }
 0x4c9   : > { %2474 = vrsqrt.f32 %v1454_v46 }
 0x4cd   : > { %v2469_v48 = vpop.eup %2468 }
 0x4ce   : > { %v1461_v50 = vmul.f32 %v2469_v48, %v1449_v47  ;;  %v2000_v48 = vld [vmem:[#allocation23] ss:$0 sm:$0xff] }
 0x4cf   : > { %v2471_v37 = vpop.eup %2470 }
 0x4d0   : > { %v1460_v28 = vmul.f32 %v2471_v37, %v1448_v35  ;;  %v1471_v42 = vmul.f32 %v1989_v49, %v1461_v50 }
 0x4d1   : > { %v2473_v23 = vpop.eup %2472 }
 0x4d2   : > { %v1470_v53 = vmul.f32 %v1989_v49, %v1460_v28  ;;  %v1463_v54 = vmul.f32 %v2473_v23, %v1451_v31  ;;  %v1481_v62 = vadd.f32 %v1990_v19, %v1471_v42 }
 0x4d3   : > { %v2475_v57 = vpop.eup %2474 }
 0x4d4   : > { %v1480_v38 = vadd.f32 %v1990_v19, %v1470_v53  ;;  %v1462_v7 = vmul.f32 %v2475_v57, %v1450_v52  ;;  %v1473_v56 = vmul.f32 %v1989_v49, %v1463_v54 }
 0x4d6   : > { %v1484_v61 = vpack.c.bf16 %v1481_v62, %v1480_v38  ;;  %v1472_v55 = vmul.f32 %v1989_v49, %v1462_v7  ;;  %v1483_v60 = vadd.f32 %v1990_v19, %v1473_v56 }
 0x4d8   : > { %2169 = vmatprep.mubr.bf16.mxu0 %v1484_v61  ;;  %v1482_v63 = vadd.f32 %v1990_v19, %v1472_v55 }
 0x4da   : > { %v1485_v6 = vpack.c.bf16 %v1483_v60, %v1482_v63 }
 0x4dc   : > { %2170 = vmatmul.mubr.bf16.vlgmr.msra.gmra.mrb[20].mxu0 %v1485_v6 }
 0x5af   : > { %v2171_v13 = vpop.f32.mrb[20].mxu0 }
 0x5b0   : > { %v1583_v2 = vadd.f32 %v2171_v13, %v1991_v0  ;;  %v1574_v22 = vpop.f32.mrb[21].mxu0 }
 0x5b1   : > { %v1575_v5 = vadd.f32 %v1991_v0, %v1574_v22  ;;  %v2172_v25 = vpop.f32.mrb[22].mxu0 }
 0x5b2   : > { %v1595_v15 = vmul.f32 0.70710677, %v1583_v2  ;;  %v1586_v29 = vadd.f32 %v2172_v25, %v1991_v0  ;;  %v1577_v1 = vpop.f32.mrb[23].mxu0  ;;  %v1591_v36 = vmul.f32 0.5, %v1583_v2 }
 0x5b3   : > { %v1593_v11 = vmul.f32 0.70710677, %v1575_v5  ;;  %v1578_v17 = vadd.f32 %v1991_v0, %v1577_v1  ;;  %v1589_v26 = vmul.f32 0.5, %v1575_v5 }
 0x5b4   : > { %2476 = verf.f32 %v1595_v15  ;;  %v1596_v16 = vmul.f32 0.70710677, %v1586_v29  ;;  %v1592_v39 = vmul.f32 0.5, %v1586_v29 }
 0x5b5   : > { %2478 = verf.f32 %v1593_v11  ;;  %v1594_v24 = vmul.f32 0.70710677, %v1578_v17  ;;  %v1590_v18 = vmul.f32 0.5, %v1578_v17 }
 0x5b6   : > { %2480 = verf.f32 %v1596_v16 }
 0x5b7   : > { %2482 = verf.f32 %v1594_v24 }
 0x5be   : > { %v2477_v27 = vpop.eup %2476 }
 0x5bf   : > { %v2479_v21 = vpop.eup %2478  ;;  %v1603_v33 = vadd.f32 1.0, %v2477_v27 }
 0x5c0   : > { %v2481_v43 = vpop.eup %2480  ;;  %v1601_v34 = vadd.f32 1.0, %v2479_v21 }
 0x5c1   : > { %v2483_v3 = vpop.eup %2482  ;;  %v1604_v40 = vadd.f32 1.0, %v2481_v43  ;;  %v1607_v14 = vmul.f32 %v1603_v33, %v1591_v36 }
 0x5c2   : > { %v1602_v20 = vadd.f32 1.0, %v2483_v3  ;;  %v1605_v44 = vmul.f32 %v1601_v34, %v1589_v26 }
 0x5c3   : > { %v1608_v41 = vmul.f32 %v1604_v40, %v1592_v39 }
 0x5c4   : > { %v1606_v45 = vmul.f32 %v1602_v20, %v1590_v18 }
 0x5c5   : > { %v1610_v46 = vpack.c.bf16 %v1608_v41, %v1607_v14 }
 0x5c6   : > { %v1609_v47 = vpack.c.bf16 %v1606_v45, %v1605_v44 }
 0x5c8   : > { %2189 = vmatprep.mubr.bf16.mxu1 %v1609_v47 }
 0x5c9   : > { %2190 = vmatmul.mubr.bf16.vlgmr.msra.gmra.mrb[20].mxu1 %v1610_v46 }
 0x69c   : > { %v2191_v49 = vpop.f32.mrb[20].mxu1 }
 0x69d   : > { %v1708_v35 = vadd.f32 %v2191_v49, %v2000_v48  ;;  %v1699_v50 = vpop.f32.mrb[21].mxu1 }
 0x69e   : > { %v1700_v37 = vadd.f32 %v2000_v48, %v1699_v50  ;;  %v2192_v31 = vpop.f32.mrb[22].mxu1 }
 0x69f   : > { %v1716_v28 = vadd.f32 %v1708_v35, %v3681_v58  ;;  %v1711_v42 = vadd.f32 %v2192_v31, %v2000_v48  ;;  %v1702_v23 = vpop.f32.mrb[23].mxu1 }
 0x6a0   : > { %v1714_v19 = vadd.f32 %v1700_v37, %v3677_v51  ;;  %v1703_v52 = vadd.f32 %v2000_v48, %v1702_v23 }
 0x6a1   : > { %2009 = vst [vmem:[%s621_s22 + $0x10] sm:$0xff] %v1716_v28  ;;  %v1717_v53 = vadd.f32 %v1711_v42, %v3687_v32 }
 0x6a2   : > { %1718 = vst [vmem:[%s621_s22] sm:$0xff] %v1714_v19  ;;  %v1715_v58 = vadd.f32 %v1703_v52, %v3684_v59 }
 0x6a3   : > { %2010 = vst [vmem:[%s621_s22 + $0x18] sm:$0xff] %v1717_v53 }
 0x6a4   : > { %1719 = vst [vmem:[%s621_s22 + $0x8] sm:$0xff] %v1715_v58 }
 0x6a5   : > { %2867 = shalt.err (!%p2864_p7)
}
 0x6a6   : > { %s2868_s22 = scalar_lea.hbm %s3715_s16, 512  ;;  %s2872_s15 = scalar_lea.hbm %s3823_s29, 1024 }
 0x6a7   : > { %p2869_p6 = scmp.ne.s32.totalorder %s3715_s16, %s2868_s22  ;;  %p2873_p13 = scmp.lt.u32.totalorder %s3715_s16, %s3823_s29 }
 0x6a8   : > { %p2874_p1 = scmp.lt.u32.totalorder %s2872_s15, %s2868_s22  ;;  %p2876_p2 = scmp.lt.u32.totalorder %s2868_s22, %s3715_s16 }
 0x6a9   : > { %p2870_p9 = pnand %p2869_p6, %p3824_p8 }
 0x6aa   : > { %p2875_p3 = por %p2874_p1, %p2873_p13 }
 0x6ab   : > { %p2871_p4 = pneg %p2870_p9 }
 0x6ac   : > { %p2877_p10 = por %p2876_p2, %p2875_p3 }
 0x6ae   : > { %p2878_p11 = pnand %p2877_p10, %p2871_p4 }
 0x6b0   : > { %2881 = shalt.err (!%p2878_p11)
}
 0x6b1   : > { %s2967_s2 = smov 128   ;;  %s2968_s0 = smov 8  }
 0x6b2   : > { %2243 = dma.vmem_to_hbm [thread:$0]  (%p3824_p8), %s3708_s17, 512, %s3715_s16, %s1724_s19, %s2967_s2, %s2967_s2, %s2968_s0  }
 0x6b3 PF: > { %s1753_s18 = sand.u32 1, %s2932_s25   ;;  %p3825_p12 = scmp.ne.s32.totalorder %s3803_s14, 0 }
 0x6b4   : > { %p3826_p0 = scmp.ge.s32.totalorder %s2944_s28, 2  ;;  %s1754_s22 = scalar_lea.sflag [#allocation5], %s1753_s18 }
 0x6b6   : > { %p2287_p5 = pnand %p3826_p0, %p3825_p12 }
 0x6b8   : > { %2927 = dma.done.wait (!%p2287_p5), %s1754_s22, 512  }
 0x6b9   : > { %2929 = vsyncadd (!%p2287_p5), %s1754_s22, 4294966784  ;;  %p32_p7 = scmp.ge.s32.totalorder %s3358_s21, 4   ;;  %s3827_s25 = smov %s2936_s26 }
 0x6ba   : > { %s3828_s26 = smov %s2940_s27  ;;  %s3829_s27 = smov %s3369_s1 }
 0x6bb   : > { %s3830_s28 = smov %s3358_s21  ;;  %34 = sbr.rel (!%p32_p7) target bundleno = 17 (0x11), region = 167 }
 0x6c2   :  { %1759 = vsyncpa [#allocation4], 1 }
 0x6c3   :  { %1761 = vsyncpa [#allocation4 + $0x1], 1 }
 0x6c4   :  { %1762 = vsyncpa [#allocation7], 1 }
 0x6c5   :  { %1763 = vsyncpa [#allocation10], 1 }
 0x6c6   :  { %1764 = vsyncpa [#allocation13], 1 }
 0x6c7   :  { %1765 = vsyncpa [#allocation16], 1 }
 0x6c8   :  { %1766 = vsyncpa [#allocation19], 1 }
 0x6c9   :  { %1767 = vsyncpa [#allocation22], 1 }
 0x6ca   :  { %1768 = vsyncpa [#allocation5], 1 }
 0x6cb   :  { %1770 = vsyncpa [#allocation5 + $0x1], 1 }

</bundles_post_ra>
